<compile_context>
chip_gen: v5e
topology: v5e:2x2
jax: 0.10.0
libtpu: 0.0.40
codegen_flags: <defaults>
</compile_context>

<pallas_src>
import functools

import jax
import jax.numpy as jnp
from jax import lax
from jax.experimental import pallas as pl
from jax.experimental.pallas import tpu as pltpu

# ----- hyperparameters (DTML.__init__ args) -----
BETA_HYP = 0.1
GLOBAL_CONTEXT_INDEX = 0
INPUT_DIM = 4
HIDDEN_DIM = 32
NUM_STOCKS = 4
NUM_HEADS = 4
NUM_LAYERS = 1

BATCH = 2
SEQ_LEN = 8


# ---------------------------------------------------------------------------
# Fused DTML forward kernel
# ---------------------------------------------------------------------------
def dtml_kernel(x_ref, wf_ref, bf_ref, wih_ref, whh_ref, blstm_ref,
                gamma_ref, beta_ref, wqkv_ref, bqkv_ref,
                w1_ref, b1_ref, w2_ref, b2_ref, wfin_ref, bfin_ref,
                o_ref, *, seq_len, batch, num_stocks, hidden_dim,
                num_layers, num_heads, beta_hyp, gci):
    T, B, S, H, L, NH = seq_len, batch, num_stocks, hidden_dim, num_layers, num_heads
    BS = B * S
    N = S - 1
    HD = H // NH
    f32 = jnp.float32

    # ---- Stage 1: feature transform + hoisted layer-0 input->hidden matmul ----
    # x_ref rows are time-major: row (t*BS + r) = sequence r at time t.
    x2d = x_ref[...]                                                     # (T*BS, Din)
    feat = jnp.tanh(
        jnp.dot(x2d, wf_ref[...], preferred_element_type=f32) + bf_ref[...])     # (T*BS, H)
    gih0 = jnp.dot(feat, wih_ref[0], preferred_element_type=f32) + blstm_ref[0]  # (T*BS, 4H)

    whh = [whh_ref[l] for l in range(L)]
    wih_hi = [wih_ref[l] for l in range(1, L)]
    bl_hi = [blstm_ref[l] for l in range(1, L)]

    def lstm_cell(gates, c_prev):  # gate order i, f, g, o (nn.LSTM)
        i_g = jax.nn.sigmoid(gates[:, 0:H])
        f_g = jax.nn.sigmoid(gates[:, H:2 * H])
        g_g = jnp.tanh(gates[:, 2 * H:3 * H])
        o_g = jax.nn.sigmoid(gates[:, 3 * H:4 * H])
        c_new = f_g * c_prev + i_g * g_g
        h_new = o_g * jnp.tanh(c_new)
        return h_new, c_new

    # ---- Stage 2: LSTM recurrence, fully unrolled, state in registers ----
    h = [jnp.zeros((BS, H), f32) for _ in range(L)]
    c = [jnp.zeros((BS, H), f32) for _ in range(L)]
    lstm_rows = []                                                        # per-t (BS, H)
    for t in range(T):
        gates0 = gih0[t * BS:(t + 1) * BS, :] + jnp.dot(
            h[0], whh[0], preferred_element_type=f32)
        h[0], c[0] = lstm_cell(gates0, c[0])
        inp = h[0]
        for l in range(1, L):
            gates = (jnp.dot(inp, wih_hi[l - 1], preferred_element_type=f32)
                     + jnp.dot(h[l], whh[l], preferred_element_type=f32)
                     + bl_hi[l - 1])
            h[l], c[l] = lstm_cell(gates, c[l])
            inp = h[l]
        lstm_rows.append(inp)

    # ---- Stage 3: temporal attention (softmax over time per sequence) ----
    h_T = lstm_rows[-1]                                                   # (BS, H)
    score = [jnp.sum(lstm_rows[t] * h_T, axis=1, keepdims=True) for t in range(T)]
    m = score[0]
    for t in range(1, T):
        m = jnp.maximum(m, score[t])
    e = [jnp.exp(score[t] - m) for t in range(T)]
    denom = e[0]
    for t in range(1, T):
        denom = denom + e[t]
    inv = pl.reciprocal(denom, approx=True)                               # (BS, 1)
    context = e[0] * inv * lstm_rows[0]
    for t in range(1, T):
        context = context + e[t] * inv * lstm_rows[t]                     # (BS, H)

    # ---- Stage 4: context normalization (unbiased std) + multi-level contexts ----
    gamma = gamma_ref[...]                                                # (S, H)
    beta = beta_ref[...]
    n_el = S * H
    mlc_wo = []                                                           # per-b (N, H)
    for b in range(B):
        blk = context[b * S:(b + 1) * S, :]                               # (S, H)
        tot = jnp.sum(jnp.sum(blk, axis=1, keepdims=True), axis=0, keepdims=True)
        mean = tot * (1.0 / n_el)
        d = blk - mean
        var = jnp.sum(jnp.sum(d * d, axis=1, keepdims=True), axis=0,
                      keepdims=True) * (1.0 / (n_el - 1))
        std = jnp.sqrt(var)
        y = gamma * (d / (std + 1e-9)) + beta                             # (S, H)
        y = y + beta_hyp * y[gci:gci + 1, :]                              # + global context
        if gci == 0:
            y = y[1:, :]
        elif gci == S - 1:
            y = y[:S - 1, :]
        else:
            y = jnp.concatenate([y[:gci, :], y[gci + 1:, :]], axis=0)
        mlc_wo.append(y)                                                  # (N, H)

    # ---- Stage 5: data-axis multi-head self-attention (fused QKV, head masks) ----
    x_att = jnp.concatenate(mlc_wo, axis=0)                               # (B*N, H)
    qkv = jnp.dot(x_att, wqkv_ref[...], preferred_element_type=f32) + bqkv_ref[...]
    q_all = qkv[:, 0:H]
    k_all = qkv[:, H:2 * H]
    v_all = qkv[:, 2 * H:3 * H]

    lane = lax.broadcasted_iota(jnp.int32, (1, H), 1)
    head_masks = [jnp.where((lane >= hh * HD) & (lane < (hh + 1) * HD),
                            1.0, 0.0).astype(f32) for hh in range(NH)]
    scale = 1.0 / (HD ** 0.5)

    res1 = []
    for b in range(B):
        qb = q_all[b * N:(b + 1) * N, :]                                  # (N, H)
        kb = k_all[b * N:(b + 1) * N, :]
        vb = v_all[b * N:(b + 1) * N, :]
        attn = jnp.zeros((N, H), f32)
        for hh in range(NH):
            mk = head_masks[hh]
            # masked full-H contraction == per-head (N, hd) contraction, no lane slicing
            energy = lax.dot_general(qb * mk, kb, (((1,), (1,)), ((), ())),
                                     preferred_element_type=f32) * scale  # (N, N)
            energy = energy - jnp.max(energy, axis=-1, keepdims=True)
            ee = jnp.exp(energy)
            sm = ee * pl.reciprocal(jnp.sum(ee, axis=-1, keepdims=True), approx=True)
            attn = attn + jnp.dot(sm, vb * mk, preferred_element_type=f32)
        # residual uses torch's raw (N, B, H) -> (B, N, H) reshape semantics
        rows = []
        for j in range(N):
            flat = b * N + j
            n_idx, b_idx = flat // B, flat % B
            rows.append(mlc_wo[b_idx][n_idx:n_idx + 1, :])
        x_res_b = jnp.concatenate(rows, axis=0)                           # (N, H)
        res1.append(x_res_b + attn)

    res1_all = jnp.concatenate(res1, axis=0)                              # (B*N, H)

    # ---- Stage 6: MLP + residual + final Linear(H, 1) ----
    hid = jnp.maximum(
        jnp.dot(res1_all, w1_ref[...], preferred_element_type=f32) + b1_ref[...], 0.0)
    mlp = jnp.dot(hid, w2_ref[...], preferred_element_type=f32) + b2_ref[...]
    out_final = jnp.tanh(res1_all + mlp)                                  # (B*N, H)
    pred = jnp.dot(out_final, wfin_ref[...], preferred_element_type=f32) + bfin_ref[...]
    o_ref[...] = pred                                                     # (B*N, 1)


def dtml_fused(x_tm2d, p):
    wqkv = jnp.concatenate([p['wq'], p['wk'], p['wv']], axis=1)           # (H, 3H)
    bqkv = jnp.concatenate([p['bq'], p['bk'], p['bv']], axis=1)           # (1, 3H)
    kernel = functools.partial(
        dtml_kernel, seq_len=SEQ_LEN, batch=BATCH, num_stocks=NUM_STOCKS,
        hidden_dim=HIDDEN_DIM, num_layers=NUM_LAYERS, num_heads=NUM_HEADS,
        beta_hyp=BETA_HYP, gci=GLOBAL_CONTEXT_INDEX)
    vmem = pl.BlockSpec(memory_space=pltpu.MemorySpace.VMEM)
    return pl.pallas_call(
        kernel,
        out_shape=jax.ShapeDtypeStruct((BATCH * (NUM_STOCKS - 1), 1), jnp.float32),
        in_specs=[vmem] * 16,
        out_specs=vmem,
    )(x_tm2d, p['wf'], p['bf'], p['wih'], p['whh'], p['blstm'],
      p['gamma'], p['beta'], wqkv, bqkv,
      p['w1'], p['b1'], p['w2'], p['b2'], p['wfin'], p['bfin'])


# ---------------------------------------------------------------------------
# Parameters (deterministic synthetic init) and full forward
# ---------------------------------------------------------------------------
def init_params(key):
    H = HIDDEN_DIM
    ks = jax.random.split(key, 20)

    def u(k, shape, scale):
        return jax.random.uniform(k, shape, jnp.float32, -scale, scale)

    p = {}
    # AttentiveLSTM
    p['wf'] = u(ks[0], (INPUT_DIM, H), 1.0 / INPUT_DIM ** 0.5)
    p['bf'] = u(ks[1], (1, H), 1.0 / INPUT_DIM ** 0.5)
    p['wih'] = u(ks[2], (NUM_LAYERS, H, 4 * H), 1.0 / H ** 0.5)
    p['whh'] = u(ks[3], (NUM_LAYERS, H, 4 * H), 1.0 / H ** 0.5)
    p['blstm'] = u(ks[4], (NUM_LAYERS, 1, 4 * H), 1.0 / H ** 0.5)
    p['gamma'] = jnp.ones((NUM_STOCKS, H), jnp.float32)
    p['beta'] = jnp.zeros((NUM_STOCKS, H), jnp.float32)
    # DataAxisSelfAttention
    p['wq'] = u(ks[5], (H, H), 1.0 / H ** 0.5)
    p['bq'] = u(ks[6], (1, H), 1.0 / H ** 0.5)
    p['wk'] = u(ks[7], (H, H), 1.0 / H ** 0.5)
    p['bk'] = u(ks[8], (1, H), 1.0 / H ** 0.5)
    p['wv'] = u(ks[9], (H, H), 1.0 / H ** 0.5)
    p['bv'] = u(ks[10], (1, H), 1.0 / H ** 0.5)
    p['w1'] = u(ks[11], (H, 4 * H), 1.0 / H ** 0.5)
    p['b1'] = u(ks[12], (1, 4 * H), 1.0 / H ** 0.5)
    p['w2'] = u(ks[13], (4 * H, H), 1.0 / (4 * H) ** 0.5)
    p['b2'] = u(ks[14], (1, H), 1.0 / (4 * H) ** 0.5)
    # final linear (H -> 1)
    p['wfin'] = u(ks[15], (H, 1), 1.0 / H ** 0.5)
    p['bfin'] = u(ks[16], (1, 1), 1.0 / H ** 0.5)
    return p


def dtml_forward(x, p):
    B, T, S, Din = x.shape
    BS = B * S
    # torch-equivalent raw reshape (B, T, S, Din) -> (B*S, T, Din), then time-major
    # 2-D layout so every timestep is a contiguous (BS, Din) sublane block.
    x_seq = x.reshape(BS, T, Din)
    x_tm = jnp.transpose(x_seq, (1, 0, 2)).reshape(T * BS, Din)
    pred = dtml_fused(x_tm, p)                      # (B*(S-1), 1)
    return pred.reshape(B, S - 1)


if __name__ == "__main__":
    key = jax.random.PRNGKey(0)
    kx, kp = jax.random.split(key)
    x = jax.random.normal(kx, (BATCH, SEQ_LEN, NUM_STOCKS, INPUT_DIM), jnp.float32)
    params = init_params(kp)

    out = jax.jit(lambda inp: dtml_forward(inp, params))(x)
    out = jax.block_until_ready(out)
    assert out.shape == (BATCH, NUM_STOCKS - 1), out.shape
    assert jnp.all(jnp.isfinite(out))
    print("KERNEL_OK")
</pallas_src>

<mosaic_0001>
module attributes {stable_mosaic.version = 11 : i64} {
  func.func @dtml_kernel(%arg0: memref<64x4xf32, #tpu.memory_space<vmem>>, %arg1: memref<4x32xf32, #tpu.memory_space<vmem>>, %arg2: memref<1x32xf32, #tpu.memory_space<vmem>>, %arg3: memref<1x32x128xf32, #tpu.memory_space<vmem>>, %arg4: memref<1x32x128xf32, #tpu.memory_space<vmem>>, %arg5: memref<1x1x128xf32, #tpu.memory_space<vmem>>, %arg6: memref<4x32xf32, #tpu.memory_space<vmem>>, %arg7: memref<4x32xf32, #tpu.memory_space<vmem>>, %arg8: memref<32x96xf32, #tpu.memory_space<vmem>>, %arg9: memref<1x96xf32, #tpu.memory_space<vmem>>, %arg10: memref<32x128xf32, #tpu.memory_space<vmem>>, %arg11: memref<1x128xf32, #tpu.memory_space<vmem>>, %arg12: memref<128x32xf32, #tpu.memory_space<vmem>>, %arg13: memref<1x32xf32, #tpu.memory_space<vmem>>, %arg14: memref<32x1xf32, #tpu.memory_space<vmem>>, %arg15: memref<1x1xf32, #tpu.memory_space<vmem>>, %arg16: memref<6x1xf32, #tpu.memory_space<vmem>>) attributes {dimension_semantics = [], scalar_prefetch = 0 : i64, scratch_operands = 0 : i64, tpu.core_type = #tpu.core_type<tc>} {
    %c0 = arith.constant 0 : index
    %c0_0 = arith.constant 0 : index
    %0 = vector.load %arg0[%c0, %c0_0] : memref<64x4xf32, #tpu.memory_space<vmem>>, vector<64x4xf32>
    %c0_1 = arith.constant 0 : index
    %c0_2 = arith.constant 0 : index
    %1 = vector.load %arg1[%c0_1, %c0_2] : memref<4x32xf32, #tpu.memory_space<vmem>>, vector<4x32xf32>
    %cst = arith.constant dense<0.000000e+00> : vector<64x32xf32>
    %2 = tpu.matmul %0, %1, %cst {dimension_numbers = #tpu.dot_dimension_numbers<[1], [0], [0], [1], [0, 0, 1, 1], [], []>} : vector<64x4xf32>, vector<4x32xf32>, vector<64x32xf32> -> vector<64x32xf32>
    %c0_3 = arith.constant 0 : index
    %c0_4 = arith.constant 0 : index
    %3 = vector.load %arg2[%c0_3, %c0_4] : memref<1x32xf32, #tpu.memory_space<vmem>>, vector<1x32xf32>
    %4 = vector.broadcast %3 : vector<1x32xf32> to vector<64x32xf32>
    %5 = arith.addf %2, %4 : vector<64x32xf32>
    %6 = math.tanh %5 : vector<64x32xf32>
    %c0_5 = arith.constant 0 : index
    %c0_6 = arith.constant 0 : index
    %c0_7 = arith.constant 0 : index
    %7 = vector.load %arg3[%c0_5, %c0_6, %c0_7] : memref<1x32x128xf32, #tpu.memory_space<vmem>>, vector<1x32x128xf32>
    %8 = vector.shape_cast %7 : vector<1x32x128xf32> to vector<32x128xf32>
    %cst_8 = arith.constant dense<0.000000e+00> : vector<64x128xf32>
    %9 = tpu.matmul %6, %8, %cst_8 {dimension_numbers = #tpu.dot_dimension_numbers<[1], [0], [0], [1], [0, 0, 1, 1], [], []>} : vector<64x32xf32>, vector<32x128xf32>, vector<64x128xf32> -> vector<64x128xf32>
    %c0_9 = arith.constant 0 : index
    %c0_10 = arith.constant 0 : index
    %c0_11 = arith.constant 0 : index
    %10 = vector.load %arg5[%c0_9, %c0_10, %c0_11] : memref<1x1x128xf32, #tpu.memory_space<vmem>>, vector<1x1x128xf32>
    %11 = vector.shape_cast %10 : vector<1x1x128xf32> to vector<1x128xf32>
    %12 = vector.broadcast %11 : vector<1x128xf32> to vector<64x128xf32>
    %13 = arith.addf %9, %12 : vector<64x128xf32>
    %c0_12 = arith.constant 0 : index
    %c0_13 = arith.constant 0 : index
    %c0_14 = arith.constant 0 : index
    %14 = vector.load %arg4[%c0_12, %c0_13, %c0_14] : memref<1x32x128xf32, #tpu.memory_space<vmem>>, vector<1x32x128xf32>
    %15 = vector.shape_cast %14 : vector<1x32x128xf32> to vector<32x128xf32>
    %cst_15 = arith.constant 0.000000e+00 : f32
    %16 = vector.broadcast %cst_15 : f32 to vector<8x32xf32>
    %cst_16 = arith.constant 0.000000e+00 : f32
    %17 = vector.broadcast %cst_16 : f32 to vector<8x32xf32>
    %18 = vector.extract_strided_slice %13 {offsets = [0, 0], sizes = [8, 128], strides = [1, 1]} : vector<64x128xf32> to vector<8x128xf32>
    %cst_17 = arith.constant dense<0.000000e+00> : vector<8x128xf32>
    %19 = tpu.matmul %16, %15, %cst_17 {dimension_numbers = #tpu.dot_dimension_numbers<[1], [0], [0], [1], [0, 0, 1, 1], [], []>} : vector<8x32xf32>, vector<32x128xf32>, vector<8x128xf32> -> vector<8x128xf32>
    %20 = arith.addf %18, %19 : vector<8x128xf32>
    %21 = vector.extract_strided_slice %20 {offsets = [0, 0], sizes = [8, 32], strides = [1, 1]} : vector<8x128xf32> to vector<8x32xf32>
    %22 = arith.negf %21 : vector<8x32xf32>
    %23 = math.exp %22 : vector<8x32xf32>
    %cst_18 = arith.constant 1.000000e+00 : f32
    %24 = vector.broadcast %cst_18 : f32 to vector<8x32xf32>
    %25 = arith.addf %24, %23 : vector<8x32xf32>
    %26 = arith.divf %24, %25 : vector<8x32xf32>
    %27 = vector.extract_strided_slice %20 {offsets = [0, 32], sizes = [8, 32], strides = [1, 1]} : vector<8x128xf32> to vector<8x32xf32>
    %28 = arith.negf %27 : vector<8x32xf32>
    %29 = math.exp %28 : vector<8x32xf32>
    %cst_19 = arith.constant 1.000000e+00 : f32
    %30 = vector.broadcast %cst_19 : f32 to vector<8x32xf32>
    %31 = arith.addf %30, %29 : vector<8x32xf32>
    %32 = arith.divf %30, %31 : vector<8x32xf32>
    %33 = vector.extract_strided_slice %20 {offsets = [0, 64], sizes = [8, 32], strides = [1, 1]} : vector<8x128xf32> to vector<8x32xf32>
    %34 = math.tanh %33 : vector<8x32xf32>
    %35 = vector.extract_strided_slice %20 {offsets = [0, 96], sizes = [8, 32], strides = [1, 1]} : vector<8x128xf32> to vector<8x32xf32>
    %36 = arith.negf %35 : vector<8x32xf32>
    %37 = math.exp %36 : vector<8x32xf32>
    %cst_20 = arith.constant 1.000000e+00 : f32
    %38 = vector.broadcast %cst_20 : f32 to vector<8x32xf32>
    %39 = arith.addf %38, %37 : vector<8x32xf32>
    %40 = arith.divf %38, %39 : vector<8x32xf32>
    %41 = arith.mulf %32, %17 : vector<8x32xf32>
    %42 = arith.mulf %26, %34 : vector<8x32xf32>
    %43 = arith.addf %41, %42 : vector<8x32xf32>
    %44 = math.tanh %43 : vector<8x32xf32>
    %45 = arith.mulf %40, %44 : vector<8x32xf32>
    %46 = vector.extract_strided_slice %13 {offsets = [8, 0], sizes = [8, 128], strides = [1, 1]} : vector<64x128xf32> to vector<8x128xf32>
    %cst_21 = arith.constant dense<0.000000e+00> : vector<8x128xf32>
    %47 = tpu.matmul %45, %15, %cst_21 {dimension_numbers = #tpu.dot_dimension_numbers<[1], [0], [0], [1], [0, 0, 1, 1], [], []>} : vector<8x32xf32>, vector<32x128xf32>, vector<8x128xf32> -> vector<8x128xf32>
    %48 = arith.addf %46, %47 : vector<8x128xf32>
    %49 = vector.extract_strided_slice %48 {offsets = [0, 0], sizes = [8, 32], strides = [1, 1]} : vector<8x128xf32> to vector<8x32xf32>
    %50 = arith.negf %49 : vector<8x32xf32>
    %51 = math.exp %50 : vector<8x32xf32>
    %cst_22 = arith.constant 1.000000e+00 : f32
    %52 = vector.broadcast %cst_22 : f32 to vector<8x32xf32>
    %53 = arith.addf %52, %51 : vector<8x32xf32>
    %54 = arith.divf %52, %53 : vector<8x32xf32>
    %55 = vector.extract_strided_slice %48 {offsets = [0, 32], sizes = [8, 32], strides = [1, 1]} : vector<8x128xf32> to vector<8x32xf32>
    %56 = arith.negf %55 : vector<8x32xf32>
    %57 = math.exp %56 : vector<8x32xf32>
    %cst_23 = arith.constant 1.000000e+00 : f32
    %58 = vector.broadcast %cst_23 : f32 to vector<8x32xf32>
    %59 = arith.addf %58, %57 : vector<8x32xf32>
    %60 = arith.divf %58, %59 : vector<8x32xf32>
    %61 = vector.extract_strided_slice %48 {offsets = [0, 64], sizes = [8, 32], strides = [1, 1]} : vector<8x128xf32> to vector<8x32xf32>
    %62 = math.tanh %61 : vector<8x32xf32>
    %63 = vector.extract_strided_slice %48 {offsets = [0, 96], sizes = [8, 32], strides = [1, 1]} : vector<8x128xf32> to vector<8x32xf32>
    %64 = arith.negf %63 : vector<8x32xf32>
    %65 = math.exp %64 : vector<8x32xf32>
    %cst_24 = arith.constant 1.000000e+00 : f32
    %66 = vector.broadcast %cst_24 : f32 to vector<8x32xf32>
    %67 = arith.addf %66, %65 : vector<8x32xf32>
    %68 = arith.divf %66, %67 : vector<8x32xf32>
    %69 = arith.mulf %60, %43 : vector<8x32xf32>
    %70 = arith.mulf %54, %62 : vector<8x32xf32>
    %71 = arith.addf %69, %70 : vector<8x32xf32>
    %72 = math.tanh %71 : vector<8x32xf32>
    %73 = arith.mulf %68, %72 : vector<8x32xf32>
    %74 = vector.extract_strided_slice %13 {offsets = [16, 0], sizes = [8, 128], strides = [1, 1]} : vector<64x128xf32> to vector<8x128xf32>
    %cst_25 = arith.constant dense<0.000000e+00> : vector<8x128xf32>
    %75 = tpu.matmul %73, %15, %cst_25 {dimension_numbers = #tpu.dot_dimension_numbers<[1], [0], [0], [1], [0, 0, 1, 1], [], []>} : vector<8x32xf32>, vector<32x128xf32>, vector<8x128xf32> -> vector<8x128xf32>
    %76 = arith.addf %74, %75 : vector<8x128xf32>
    %77 = vector.extract_strided_slice %76 {offsets = [0, 0], sizes = [8, 32], strides = [1, 1]} : vector<8x128xf32> to vector<8x32xf32>
    %78 = arith.negf %77 : vector<8x32xf32>
    %79 = math.exp %78 : vector<8x32xf32>
    %cst_26 = arith.constant 1.000000e+00 : f32
    %80 = vector.broadcast %cst_26 : f32 to vector<8x32xf32>
    %81 = arith.addf %80, %79 : vector<8x32xf32>
    %82 = arith.divf %80, %81 : vector<8x32xf32>
    %83 = vector.extract_strided_slice %76 {offsets = [0, 32], sizes = [8, 32], strides = [1, 1]} : vector<8x128xf32> to vector<8x32xf32>
    %84 = arith.negf %83 : vector<8x32xf32>
    %85 = math.exp %84 : vector<8x32xf32>
    %cst_27 = arith.constant 1.000000e+00 : f32
    %86 = vector.broadcast %cst_27 : f32 to vector<8x32xf32>
    %87 = arith.addf %86, %85 : vector<8x32xf32>
    %88 = arith.divf %86, %87 : vector<8x32xf32>
    %89 = vector.extract_strided_slice %76 {offsets = [0, 64], sizes = [8, 32], strides = [1, 1]} : vector<8x128xf32> to vector<8x32xf32>
    %90 = math.tanh %89 : vector<8x32xf32>
    %91 = vector.extract_strided_slice %76 {offsets = [0, 96], sizes = [8, 32], strides = [1, 1]} : vector<8x128xf32> to vector<8x32xf32>
    %92 = arith.negf %91 : vector<8x32xf32>
    %93 = math.exp %92 : vector<8x32xf32>
    %cst_28 = arith.constant 1.000000e+00 : f32
    %94 = vector.broadcast %cst_28 : f32 to vector<8x32xf32>
    %95 = arith.addf %94, %93 : vector<8x32xf32>
    %96 = arith.divf %94, %95 : vector<8x32xf32>
    %97 = arith.mulf %88, %71 : vector<8x32xf32>
    %98 = arith.mulf %82, %90 : vector<8x32xf32>
    %99 = arith.addf %97, %98 : vector<8x32xf32>
    %100 = math.tanh %99 : vector<8x32xf32>
    %101 = arith.mulf %96, %100 : vector<8x32xf32>
    %102 = vector.extract_strided_slice %13 {offsets = [24, 0], sizes = [8, 128], strides = [1, 1]} : vector<64x128xf32> to vector<8x128xf32>
    %cst_29 = arith.constant dense<0.000000e+00> : vector<8x128xf32>
    %103 = tpu.matmul %101, %15, %cst_29 {dimension_numbers = #tpu.dot_dimension_numbers<[1], [0], [0], [1], [0, 0, 1, 1], [], []>} : vector<8x32xf32>, vector<32x128xf32>, vector<8x128xf32> -> vector<8x128xf32>
    %104 = arith.addf %102, %103 : vector<8x128xf32>
    %105 = vector.extract_strided_slice %104 {offsets = [0, 0], sizes = [8, 32], strides = [1, 1]} : vector<8x128xf32> to vector<8x32xf32>
    %106 = arith.negf %105 : vector<8x32xf32>
    %107 = math.exp %106 : vector<8x32xf32>
    %cst_30 = arith.constant 1.000000e+00 : f32
    %108 = vector.broadcast %cst_30 : f32 to vector<8x32xf32>
    %109 = arith.addf %108, %107 : vector<8x32xf32>
    %110 = arith.divf %108, %109 : vector<8x32xf32>
    %111 = vector.extract_strided_slice %104 {offsets = [0, 32], sizes = [8, 32], strides = [1, 1]} : vector<8x128xf32> to vector<8x32xf32>
    %112 = arith.negf %111 : vector<8x32xf32>
    %113 = math.exp %112 : vector<8x32xf32>
    %cst_31 = arith.constant 1.000000e+00 : f32
    %114 = vector.broadcast %cst_31 : f32 to vector<8x32xf32>
    %115 = arith.addf %114, %113 : vector<8x32xf32>
    %116 = arith.divf %114, %115 : vector<8x32xf32>
    %117 = vector.extract_strided_slice %104 {offsets = [0, 64], sizes = [8, 32], strides = [1, 1]} : vector<8x128xf32> to vector<8x32xf32>
    %118 = math.tanh %117 : vector<8x32xf32>
    %119 = vector.extract_strided_slice %104 {offsets = [0, 96], sizes = [8, 32], strides = [1, 1]} : vector<8x128xf32> to vector<8x32xf32>
    %120 = arith.negf %119 : vector<8x32xf32>
    %121 = math.exp %120 : vector<8x32xf32>
    %cst_32 = arith.constant 1.000000e+00 : f32
    %122 = vector.broadcast %cst_32 : f32 to vector<8x32xf32>
    %123 = arith.addf %122, %121 : vector<8x32xf32>
    %124 = arith.divf %122, %123 : vector<8x32xf32>
    %125 = arith.mulf %116, %99 : vector<8x32xf32>
    %126 = arith.mulf %110, %118 : vector<8x32xf32>
    %127 = arith.addf %125, %126 : vector<8x32xf32>
    %128 = math.tanh %127 : vector<8x32xf32>
    %129 = arith.mulf %124, %128 : vector<8x32xf32>
    %130 = vector.extract_strided_slice %13 {offsets = [32, 0], sizes = [8, 128], strides = [1, 1]} : vector<64x128xf32> to vector<8x128xf32>
    %cst_33 = arith.constant dense<0.000000e+00> : vector<8x128xf32>
    %131 = tpu.matmul %129, %15, %cst_33 {dimension_numbers = #tpu.dot_dimension_numbers<[1], [0], [0], [1], [0, 0, 1, 1], [], []>} : vector<8x32xf32>, vector<32x128xf32>, vector<8x128xf32> -> vector<8x128xf32>
    %132 = arith.addf %130, %131 : vector<8x128xf32>
    %133 = vector.extract_strided_slice %132 {offsets = [0, 0], sizes = [8, 32], strides = [1, 1]} : vector<8x128xf32> to vector<8x32xf32>
    %134 = arith.negf %133 : vector<8x32xf32>
    %135 = math.exp %134 : vector<8x32xf32>
    %cst_34 = arith.constant 1.000000e+00 : f32
    %136 = vector.broadcast %cst_34 : f32 to vector<8x32xf32>
    %137 = arith.addf %136, %135 : vector<8x32xf32>
    %138 = arith.divf %136, %137 : vector<8x32xf32>
    %139 = vector.extract_strided_slice %132 {offsets = [0, 32], sizes = [8, 32], strides = [1, 1]} : vector<8x128xf32> to vector<8x32xf32>
    %140 = arith.negf %139 : vector<8x32xf32>
    %141 = math.exp %140 : vector<8x32xf32>
    %cst_35 = arith.constant 1.000000e+00 : f32
    %142 = vector.broadcast %cst_35 : f32 to vector<8x32xf32>
    %143 = arith.addf %142, %141 : vector<8x32xf32>
    %144 = arith.divf %142, %143 : vector<8x32xf32>
    %145 = vector.extract_strided_slice %132 {offsets = [0, 64], sizes = [8, 32], strides = [1, 1]} : vector<8x128xf32> to vector<8x32xf32>
    %146 = math.tanh %145 : vector<8x32xf32>
    %147 = vector.extract_strided_slice %132 {offsets = [0, 96], sizes = [8, 32], strides = [1, 1]} : vector<8x128xf32> to vector<8x32xf32>
    %148 = arith.negf %147 : vector<8x32xf32>
    %149 = math.exp %148 : vector<8x32xf32>
    %cst_36 = arith.constant 1.000000e+00 : f32
    %150 = vector.broadcast %cst_36 : f32 to vector<8x32xf32>
    %151 = arith.addf %150, %149 : vector<8x32xf32>
    %152 = arith.divf %150, %151 : vector<8x32xf32>
    %153 = arith.mulf %144, %127 : vector<8x32xf32>
    %154 = arith.mulf %138, %146 : vector<8x32xf32>
    %155 = arith.addf %153, %154 : vector<8x32xf32>
    %156 = math.tanh %155 : vector<8x32xf32>
    %157 = arith.mulf %152, %156 : vector<8x32xf32>
    %158 = vector.extract_strided_slice %13 {offsets = [40, 0], sizes = [8, 128], strides = [1, 1]} : vector<64x128xf32> to vector<8x128xf32>
    %cst_37 = arith.constant dense<0.000000e+00> : vector<8x128xf32>
    %159 = tpu.matmul %157, %15, %cst_37 {dimension_numbers = #tpu.dot_dimension_numbers<[1], [0], [0], [1], [0, 0, 1, 1], [], []>} : vector<8x32xf32>, vector<32x128xf32>, vector<8x128xf32> -> vector<8x128xf32>
    %160 = arith.addf %158, %159 : vector<8x128xf32>
    %161 = vector.extract_strided_slice %160 {offsets = [0, 0], sizes = [8, 32], strides = [1, 1]} : vector<8x128xf32> to vector<8x32xf32>
    %162 = arith.negf %161 : vector<8x32xf32>
    %163 = math.exp %162 : vector<8x32xf32>
    %cst_38 = arith.constant 1.000000e+00 : f32
    %164 = vector.broadcast %cst_38 : f32 to vector<8x32xf32>
    %165 = arith.addf %164, %163 : vector<8x32xf32>
    %166 = arith.divf %164, %165 : vector<8x32xf32>
    %167 = vector.extract_strided_slice %160 {offsets = [0, 32], sizes = [8, 32], strides = [1, 1]} : vector<8x128xf32> to vector<8x32xf32>
    %168 = arith.negf %167 : vector<8x32xf32>
    %169 = math.exp %168 : vector<8x32xf32>
    %cst_39 = arith.constant 1.000000e+00 : f32
    %170 = vector.broadcast %cst_39 : f32 to vector<8x32xf32>
    %171 = arith.addf %170, %169 : vector<8x32xf32>
    %172 = arith.divf %170, %171 : vector<8x32xf32>
    %173 = vector.extract_strided_slice %160 {offsets = [0, 64], sizes = [8, 32], strides = [1, 1]} : vector<8x128xf32> to vector<8x32xf32>
    %174 = math.tanh %173 : vector<8x32xf32>
    %175 = vector.extract_strided_slice %160 {offsets = [0, 96], sizes = [8, 32], strides = [1, 1]} : vector<8x128xf32> to vector<8x32xf32>
    %176 = arith.negf %175 : vector<8x32xf32>
    %177 = math.exp %176 : vector<8x32xf32>
    %cst_40 = arith.constant 1.000000e+00 : f32
    %178 = vector.broadcast %cst_40 : f32 to vector<8x32xf32>
    %179 = arith.addf %178, %177 : vector<8x32xf32>
    %180 = arith.divf %178, %179 : vector<8x32xf32>
    %181 = arith.mulf %172, %155 : vector<8x32xf32>
    %182 = arith.mulf %166, %174 : vector<8x32xf32>
    %183 = arith.addf %181, %182 : vector<8x32xf32>
    %184 = math.tanh %183 : vector<8x32xf32>
    %185 = arith.mulf %180, %184 : vector<8x32xf32>
    %186 = vector.extract_strided_slice %13 {offsets = [48, 0], sizes = [8, 128], strides = [1, 1]} : vector<64x128xf32> to vector<8x128xf32>
    %cst_41 = arith.constant dense<0.000000e+00> : vector<8x128xf32>
    %187 = tpu.matmul %185, %15, %cst_41 {dimension_numbers = #tpu.dot_dimension_numbers<[1], [0], [0], [1], [0, 0, 1, 1], [], []>} : vector<8x32xf32>, vector<32x128xf32>, vector<8x128xf32> -> vector<8x128xf32>
    %188 = arith.addf %186, %187 : vector<8x128xf32>
    %189 = vector.extract_strided_slice %188 {offsets = [0, 0], sizes = [8, 32], strides = [1, 1]} : vector<8x128xf32> to vector<8x32xf32>
    %190 = arith.negf %189 : vector<8x32xf32>
    %191 = math.exp %190 : vector<8x32xf32>
    %cst_42 = arith.constant 1.000000e+00 : f32
    %192 = vector.broadcast %cst_42 : f32 to vector<8x32xf32>
    %193 = arith.addf %192, %191 : vector<8x32xf32>
    %194 = arith.divf %192, %193 : vector<8x32xf32>
    %195 = vector.extract_strided_slice %188 {offsets = [0, 32], sizes = [8, 32], strides = [1, 1]} : vector<8x128xf32> to vector<8x32xf32>
    %196 = arith.negf %195 : vector<8x32xf32>
    %197 = math.exp %196 : vector<8x32xf32>
    %cst_43 = arith.constant 1.000000e+00 : f32
    %198 = vector.broadcast %cst_43 : f32 to vector<8x32xf32>
    %199 = arith.addf %198, %197 : vector<8x32xf32>
    %200 = arith.divf %198, %199 : vector<8x32xf32>
    %201 = vector.extract_strided_slice %188 {offsets = [0, 64], sizes = [8, 32], strides = [1, 1]} : vector<8x128xf32> to vector<8x32xf32>
    %202 = math.tanh %201 : vector<8x32xf32>
    %203 = vector.extract_strided_slice %188 {offsets = [0, 96], sizes = [8, 32], strides = [1, 1]} : vector<8x128xf32> to vector<8x32xf32>
    %204 = arith.negf %203 : vector<8x32xf32>
    %205 = math.exp %204 : vector<8x32xf32>
    %cst_44 = arith.constant 1.000000e+00 : f32
    %206 = vector.broadcast %cst_44 : f32 to vector<8x32xf32>
    %207 = arith.addf %206, %205 : vector<8x32xf32>
    %208 = arith.divf %206, %207 : vector<8x32xf32>
    %209 = arith.mulf %200, %183 : vector<8x32xf32>
    %210 = arith.mulf %194, %202 : vector<8x32xf32>
    %211 = arith.addf %209, %210 : vector<8x32xf32>
    %212 = math.tanh %211 : vector<8x32xf32>
    %213 = arith.mulf %208, %212 : vector<8x32xf32>
    %214 = vector.extract_strided_slice %13 {offsets = [56, 0], sizes = [8, 128], strides = [1, 1]} : vector<64x128xf32> to vector<8x128xf32>
    %cst_45 = arith.constant dense<0.000000e+00> : vector<8x128xf32>
    %215 = tpu.matmul %213, %15, %cst_45 {dimension_numbers = #tpu.dot_dimension_numbers<[1], [0], [0], [1], [0, 0, 1, 1], [], []>} : vector<8x32xf32>, vector<32x128xf32>, vector<8x128xf32> -> vector<8x128xf32>
    %216 = arith.addf %214, %215 : vector<8x128xf32>
    %217 = vector.extract_strided_slice %216 {offsets = [0, 0], sizes = [8, 32], strides = [1, 1]} : vector<8x128xf32> to vector<8x32xf32>
    %218 = arith.negf %217 : vector<8x32xf32>
    %219 = math.exp %218 : vector<8x32xf32>
    %cst_46 = arith.constant 1.000000e+00 : f32
    %220 = vector.broadcast %cst_46 : f32 to vector<8x32xf32>
    %221 = arith.addf %220, %219 : vector<8x32xf32>
    %222 = arith.divf %220, %221 : vector<8x32xf32>
    %223 = vector.extract_strided_slice %216 {offsets = [0, 32], sizes = [8, 32], strides = [1, 1]} : vector<8x128xf32> to vector<8x32xf32>
    %224 = arith.negf %223 : vector<8x32xf32>
    %225 = math.exp %224 : vector<8x32xf32>
    %cst_47 = arith.constant 1.000000e+00 : f32
    %226 = vector.broadcast %cst_47 : f32 to vector<8x32xf32>
    %227 = arith.addf %226, %225 : vector<8x32xf32>
    %228 = arith.divf %226, %227 : vector<8x32xf32>
    %229 = vector.extract_strided_slice %216 {offsets = [0, 64], sizes = [8, 32], strides = [1, 1]} : vector<8x128xf32> to vector<8x32xf32>
    %230 = math.tanh %229 : vector<8x32xf32>
    %231 = vector.extract_strided_slice %216 {offsets = [0, 96], sizes = [8, 32], strides = [1, 1]} : vector<8x128xf32> to vector<8x32xf32>
    %232 = arith.negf %231 : vector<8x32xf32>
    %233 = math.exp %232 : vector<8x32xf32>
    %cst_48 = arith.constant 1.000000e+00 : f32
    %234 = vector.broadcast %cst_48 : f32 to vector<8x32xf32>
    %235 = arith.addf %234, %233 : vector<8x32xf32>
    %236 = arith.divf %234, %235 : vector<8x32xf32>
    %237 = arith.mulf %228, %211 : vector<8x32xf32>
    %238 = arith.mulf %222, %230 : vector<8x32xf32>
    %239 = arith.addf %237, %238 : vector<8x32xf32>
    %240 = math.tanh %239 : vector<8x32xf32>
    %241 = arith.mulf %236, %240 : vector<8x32xf32>
    %242 = arith.mulf %45, %241 : vector<8x32xf32>
    %cst_49 = arith.constant dense<0.000000e+00> : vector<8xf32>
    %243 = vector.multi_reduction <add>, %242, %cst_49 [1] : vector<8x32xf32> to vector<8xf32>
    %244 = vector.shape_cast %243 : vector<8xf32> to vector<8x1xf32>
    %245 = arith.mulf %73, %241 : vector<8x32xf32>
    %cst_50 = arith.constant dense<0.000000e+00> : vector<8xf32>
    %246 = vector.multi_reduction <add>, %245, %cst_50 [1] : vector<8x32xf32> to vector<8xf32>
    %247 = vector.shape_cast %246 : vector<8xf32> to vector<8x1xf32>
    %248 = arith.mulf %101, %241 : vector<8x32xf32>
    %cst_51 = arith.constant dense<0.000000e+00> : vector<8xf32>
    %249 = vector.multi_reduction <add>, %248, %cst_51 [1] : vector<8x32xf32> to vector<8xf32>
    %250 = vector.shape_cast %249 : vector<8xf32> to vector<8x1xf32>
    %251 = arith.mulf %129, %241 : vector<8x32xf32>
    %cst_52 = arith.constant dense<0.000000e+00> : vector<8xf32>
    %252 = vector.multi_reduction <add>, %251, %cst_52 [1] : vector<8x32xf32> to vector<8xf32>
    %253 = vector.shape_cast %252 : vector<8xf32> to vector<8x1xf32>
    %254 = arith.mulf %157, %241 : vector<8x32xf32>
    %cst_53 = arith.constant dense<0.000000e+00> : vector<8xf32>
    %255 = vector.multi_reduction <add>, %254, %cst_53 [1] : vector<8x32xf32> to vector<8xf32>
    %256 = vector.shape_cast %255 : vector<8xf32> to vector<8x1xf32>
    %257 = arith.mulf %185, %241 : vector<8x32xf32>
    %cst_54 = arith.constant dense<0.000000e+00> : vector<8xf32>
    %258 = vector.multi_reduction <add>, %257, %cst_54 [1] : vector<8x32xf32> to vector<8xf32>
    %259 = vector.shape_cast %258 : vector<8xf32> to vector<8x1xf32>
    %260 = arith.mulf %213, %241 : vector<8x32xf32>
    %cst_55 = arith.constant dense<0.000000e+00> : vector<8xf32>
    %261 = vector.multi_reduction <add>, %260, %cst_55 [1] : vector<8x32xf32> to vector<8xf32>
    %262 = vector.shape_cast %261 : vector<8xf32> to vector<8x1xf32>
    %263 = arith.mulf %241, %241 : vector<8x32xf32>
    %cst_56 = arith.constant dense<0.000000e+00> : vector<8xf32>
    %264 = vector.multi_reduction <add>, %263, %cst_56 [1] : vector<8x32xf32> to vector<8xf32>
    %265 = vector.shape_cast %264 : vector<8xf32> to vector<8x1xf32>
    %266 = arith.maximumf %244, %247 : vector<8x1xf32>
    %267 = arith.maximumf %266, %250 : vector<8x1xf32>
    %268 = arith.maximumf %267, %253 : vector<8x1xf32>
    %269 = arith.maximumf %268, %256 : vector<8x1xf32>
    %270 = arith.maximumf %269, %259 : vector<8x1xf32>
    %271 = arith.maximumf %270, %262 : vector<8x1xf32>
    %272 = arith.maximumf %271, %265 : vector<8x1xf32>
    %273 = arith.subf %244, %272 : vector<8x1xf32>
    %274 = math.exp %273 : vector<8x1xf32>
    %275 = arith.subf %247, %272 : vector<8x1xf32>
    %276 = math.exp %275 : vector<8x1xf32>
    %277 = arith.subf %250, %272 : vector<8x1xf32>
    %278 = math.exp %277 : vector<8x1xf32>
    %279 = arith.subf %253, %272 : vector<8x1xf32>
    %280 = math.exp %279 : vector<8x1xf32>
    %281 = arith.subf %256, %272 : vector<8x1xf32>
    %282 = math.exp %281 : vector<8x1xf32>
    %283 = arith.subf %259, %272 : vector<8x1xf32>
    %284 = math.exp %283 : vector<8x1xf32>
    %285 = arith.subf %262, %272 : vector<8x1xf32>
    %286 = math.exp %285 : vector<8x1xf32>
    %287 = arith.subf %265, %272 : vector<8x1xf32>
    %288 = math.exp %287 : vector<8x1xf32>
    %289 = arith.addf %274, %276 : vector<8x1xf32>
    %290 = arith.addf %289, %278 : vector<8x1xf32>
    %291 = arith.addf %290, %280 : vector<8x1xf32>
    %292 = arith.addf %291, %282 : vector<8x1xf32>
    %293 = arith.addf %292, %284 : vector<8x1xf32>
    %294 = arith.addf %293, %286 : vector<8x1xf32>
    %295 = arith.addf %294, %288 : vector<8x1xf32>
    %296 = tpu.reciprocal %295 {approx = true} : vector<8x1xf32> -> vector<8x1xf32>
    %297 = arith.mulf %274, %296 : vector<8x1xf32>
    %298 = vector.broadcast %297 : vector<8x1xf32> to vector<8x32xf32>
    %299 = arith.mulf %298, %45 : vector<8x32xf32>
    %300 = arith.mulf %276, %296 : vector<8x1xf32>
    %301 = vector.broadcast %300 : vector<8x1xf32> to vector<8x32xf32>
    %302 = arith.mulf %301, %73 : vector<8x32xf32>
    %303 = arith.addf %299, %302 : vector<8x32xf32>
    %304 = arith.mulf %278, %296 : vector<8x1xf32>
    %305 = vector.broadcast %304 : vector<8x1xf32> to vector<8x32xf32>
    %306 = arith.mulf %305, %101 : vector<8x32xf32>
    %307 = arith.addf %303, %306 : vector<8x32xf32>
    %308 = arith.mulf %280, %296 : vector<8x1xf32>
    %309 = vector.broadcast %308 : vector<8x1xf32> to vector<8x32xf32>
    %310 = arith.mulf %309, %129 : vector<8x32xf32>
    %311 = arith.addf %307, %310 : vector<8x32xf32>
    %312 = arith.mulf %282, %296 : vector<8x1xf32>
    %313 = vector.broadcast %312 : vector<8x1xf32> to vector<8x32xf32>
    %314 = arith.mulf %313, %157 : vector<8x32xf32>
    %315 = arith.addf %311, %314 : vector<8x32xf32>
    %316 = arith.mulf %284, %296 : vector<8x1xf32>
    %317 = vector.broadcast %316 : vector<8x1xf32> to vector<8x32xf32>
    %318 = arith.mulf %317, %185 : vector<8x32xf32>
    %319 = arith.addf %315, %318 : vector<8x32xf32>
    %320 = arith.mulf %286, %296 : vector<8x1xf32>
    %321 = vector.broadcast %320 : vector<8x1xf32> to vector<8x32xf32>
    %322 = arith.mulf %321, %213 : vector<8x32xf32>
    %323 = arith.addf %319, %322 : vector<8x32xf32>
    %324 = arith.mulf %288, %296 : vector<8x1xf32>
    %325 = vector.broadcast %324 : vector<8x1xf32> to vector<8x32xf32>
    %326 = arith.mulf %325, %241 : vector<8x32xf32>
    %327 = arith.addf %323, %326 : vector<8x32xf32>
    %c0_57 = arith.constant 0 : index
    %c0_58 = arith.constant 0 : index
    %328 = vector.load %arg6[%c0_57, %c0_58] : memref<4x32xf32, #tpu.memory_space<vmem>>, vector<4x32xf32>
    %c0_59 = arith.constant 0 : index
    %c0_60 = arith.constant 0 : index
    %329 = vector.load %arg7[%c0_59, %c0_60] : memref<4x32xf32, #tpu.memory_space<vmem>>, vector<4x32xf32>
    %330 = vector.extract_strided_slice %327 {offsets = [0, 0], sizes = [4, 32], strides = [1, 1]} : vector<8x32xf32> to vector<4x32xf32>
    %cst_61 = arith.constant dense<0.000000e+00> : vector<4xf32>
    %331 = vector.multi_reduction <add>, %330, %cst_61 [1] : vector<4x32xf32> to vector<4xf32>
    %332 = vector.shape_cast %331 : vector<4xf32> to vector<4x1xf32>
    %cst_62 = arith.constant dense<0.000000e+00> : vector<1xf32>
    %333 = vector.multi_reduction <add>, %332, %cst_62 [0] : vector<4x1xf32> to vector<1xf32>
    %334 = vector.shape_cast %333 : vector<1xf32> to vector<1x1xf32>
    %cst_63 = arith.constant 7.812500e-03 : f32
    %335 = vector.broadcast %cst_63 : f32 to vector<1x1xf32>
    %336 = arith.mulf %334, %335 : vector<1x1xf32>
    %337 = vector.broadcast %336 : vector<1x1xf32> to vector<4x32xf32>
    %338 = arith.subf %330, %337 : vector<4x32xf32>
    %339 = arith.mulf %338, %338 : vector<4x32xf32>
    %cst_64 = arith.constant dense<0.000000e+00> : vector<4xf32>
    %340 = vector.multi_reduction <add>, %339, %cst_64 [1] : vector<4x32xf32> to vector<4xf32>
    %341 = vector.shape_cast %340 : vector<4xf32> to vector<4x1xf32>
    %cst_65 = arith.constant dense<0.000000e+00> : vector<1xf32>
    %342 = vector.multi_reduction <add>, %341, %cst_65 [0] : vector<4x1xf32> to vector<1xf32>
    %343 = vector.shape_cast %342 : vector<1xf32> to vector<1x1xf32>
    %cst_66 = arith.constant 0.00787401571 : f32
    %344 = vector.broadcast %cst_66 : f32 to vector<1x1xf32>
    %345 = arith.mulf %343, %344 : vector<1x1xf32>
    %346 = math.sqrt %345 : vector<1x1xf32>
    %cst_67 = arith.constant 9.99999971E-10 : f32
    %347 = vector.broadcast %cst_67 : f32 to vector<1x1xf32>
    %348 = arith.addf %346, %347 : vector<1x1xf32>
    %349 = vector.broadcast %348 : vector<1x1xf32> to vector<4x32xf32>
    %350 = arith.divf %338, %349 : vector<4x32xf32>
    %351 = arith.mulf %328, %350 : vector<4x32xf32>
    %352 = arith.addf %351, %329 : vector<4x32xf32>
    %353 = vector.extract_strided_slice %352 {offsets = [0, 0], sizes = [1, 32], strides = [1, 1]} : vector<4x32xf32> to vector<1x32xf32>
    %cst_68 = arith.constant 1.000000e-01 : f32
    %354 = vector.broadcast %cst_68 : f32 to vector<1x32xf32>
    %355 = arith.mulf %354, %353 : vector<1x32xf32>
    %356 = vector.broadcast %355 : vector<1x32xf32> to vector<4x32xf32>
    %357 = arith.addf %352, %356 : vector<4x32xf32>
    %358 = vector.extract_strided_slice %357 {offsets = [1, 0], sizes = [3, 32], strides = [1, 1]} : vector<4x32xf32> to vector<3x32xf32>
    %359 = vector.extract_strided_slice %327 {offsets = [4, 0], sizes = [4, 32], strides = [1, 1]} : vector<8x32xf32> to vector<4x32xf32>
    %cst_69 = arith.constant dense<0.000000e+00> : vector<4xf32>
    %360 = vector.multi_reduction <add>, %359, %cst_69 [1] : vector<4x32xf32> to vector<4xf32>
    %361 = vector.shape_cast %360 : vector<4xf32> to vector<4x1xf32>
    %cst_70 = arith.constant dense<0.000000e+00> : vector<1xf32>
    %362 = vector.multi_reduction <add>, %361, %cst_70 [0] : vector<4x1xf32> to vector<1xf32>
    %363 = vector.shape_cast %362 : vector<1xf32> to vector<1x1xf32>
    %cst_71 = arith.constant 7.812500e-03 : f32
    %364 = vector.broadcast %cst_71 : f32 to vector<1x1xf32>
    %365 = arith.mulf %363, %364 : vector<1x1xf32>
    %366 = vector.broadcast %365 : vector<1x1xf32> to vector<4x32xf32>
    %367 = arith.subf %359, %366 : vector<4x32xf32>
    %368 = arith.mulf %367, %367 : vector<4x32xf32>
    %cst_72 = arith.constant dense<0.000000e+00> : vector<4xf32>
    %369 = vector.multi_reduction <add>, %368, %cst_72 [1] : vector<4x32xf32> to vector<4xf32>
    %370 = vector.shape_cast %369 : vector<4xf32> to vector<4x1xf32>
    %cst_73 = arith.constant dense<0.000000e+00> : vector<1xf32>
    %371 = vector.multi_reduction <add>, %370, %cst_73 [0] : vector<4x1xf32> to vector<1xf32>
    %372 = vector.shape_cast %371 : vector<1xf32> to vector<1x1xf32>
    %cst_74 = arith.constant 0.00787401571 : f32
    %373 = vector.broadcast %cst_74 : f32 to vector<1x1xf32>
    %374 = arith.mulf %372, %373 : vector<1x1xf32>
    %375 = math.sqrt %374 : vector<1x1xf32>
    %cst_75 = arith.constant 9.99999971E-10 : f32
    %376 = vector.broadcast %cst_75 : f32 to vector<1x1xf32>
    %377 = arith.addf %375, %376 : vector<1x1xf32>
    %378 = vector.broadcast %377 : vector<1x1xf32> to vector<4x32xf32>
    %379 = arith.divf %367, %378 : vector<4x32xf32>
    %380 = arith.mulf %328, %379 : vector<4x32xf32>
    %381 = arith.addf %380, %329 : vector<4x32xf32>
    %382 = vector.extract_strided_slice %381 {offsets = [0, 0], sizes = [1, 32], strides = [1, 1]} : vector<4x32xf32> to vector<1x32xf32>
    %cst_76 = arith.constant 1.000000e-01 : f32
    %383 = vector.broadcast %cst_76 : f32 to vector<1x32xf32>
    %384 = arith.mulf %383, %382 : vector<1x32xf32>
    %385 = vector.broadcast %384 : vector<1x32xf32> to vector<4x32xf32>
    %386 = arith.addf %381, %385 : vector<4x32xf32>
    %387 = vector.extract_strided_slice %386 {offsets = [1, 0], sizes = [3, 32], strides = [1, 1]} : vector<4x32xf32> to vector<3x32xf32>
    %388 = tpu.concatenate %358, %387 in 0 : vector<3x32xf32>, vector<3x32xf32> -> vector<6x32xf32>
    %c0_77 = arith.constant 0 : index
    %c0_78 = arith.constant 0 : index
    %389 = vector.load %arg8[%c0_77, %c0_78] : memref<32x96xf32, #tpu.memory_space<vmem>>, vector<32x96xf32>
    %cst_79 = arith.constant dense<0.000000e+00> : vector<6x96xf32>
    %390 = tpu.matmul %388, %389, %cst_79 {dimension_numbers = #tpu.dot_dimension_numbers<[1], [0], [0], [1], [0, 0, 1, 1], [], []>} : vector<6x32xf32>, vector<32x96xf32>, vector<6x96xf32> -> vector<6x96xf32>
    %c0_80 = arith.constant 0 : index
    %c0_81 = arith.constant 0 : index
    %391 = vector.load %arg9[%c0_80, %c0_81] : memref<1x96xf32, #tpu.memory_space<vmem>>, vector<1x96xf32>
    %392 = vector.broadcast %391 : vector<1x96xf32> to vector<6x96xf32>
    %393 = arith.addf %390, %392 : vector<6x96xf32>
    %394 = vector.extract_strided_slice %393 {offsets = [0, 0], sizes = [6, 32], strides = [1, 1]} : vector<6x96xf32> to vector<6x32xf32>
    %395 = vector.extract_strided_slice %393 {offsets = [0, 32], sizes = [6, 32], strides = [1, 1]} : vector<6x96xf32> to vector<6x32xf32>
    %396 = vector.extract_strided_slice %393 {offsets = [0, 64], sizes = [6, 32], strides = [1, 1]} : vector<6x96xf32> to vector<6x32xf32>
    %397 = tpu.iota {dimensions = array<i32: 1>} : vector<1x32xi32>
    %c0_i32 = arith.constant 0 : i32
    %398 = vector.broadcast %c0_i32 : i32 to vector<1x32xi32>
    %399 = arith.cmpi sge, %397, %398 : vector<1x32xi32>
    %c8_i32 = arith.constant 8 : i32
    %400 = vector.broadcast %c8_i32 : i32 to vector<1x32xi32>
    %401 = arith.cmpi slt, %397, %400 : vector<1x32xi32>
    %402 = arith.andi %399, %401 : vector<1x32xi1>
    %cst_82 = arith.constant 1.000000e+00 : f32
    %cst_83 = arith.constant 0.000000e+00 : f32
    %403 = vector.broadcast %cst_82 : f32 to vector<1x32xf32>
    %404 = vector.broadcast %cst_83 : f32 to vector<1x32xf32>
    %405 = arith.select %402, %403, %404 : vector<1x32xi1>, vector<1x32xf32>
    %c8_i32_84 = arith.constant 8 : i32
    %406 = vector.broadcast %c8_i32_84 : i32 to vector<1x32xi32>
    %407 = arith.cmpi sge, %397, %406 : vector<1x32xi32>
    %c16_i32 = arith.constant 16 : i32
    %408 = vector.broadcast %c16_i32 : i32 to vector<1x32xi32>
    %409 = arith.cmpi slt, %397, %408 : vector<1x32xi32>
    %410 = arith.andi %407, %409 : vector<1x32xi1>
    %cst_85 = arith.constant 1.000000e+00 : f32
    %cst_86 = arith.constant 0.000000e+00 : f32
    %411 = vector.broadcast %cst_85 : f32 to vector<1x32xf32>
    %412 = vector.broadcast %cst_86 : f32 to vector<1x32xf32>
    %413 = arith.select %410, %411, %412 : vector<1x32xi1>, vector<1x32xf32>
    %c16_i32_87 = arith.constant 16 : i32
    %414 = vector.broadcast %c16_i32_87 : i32 to vector<1x32xi32>
    %415 = arith.cmpi sge, %397, %414 : vector<1x32xi32>
    %c24_i32 = arith.constant 24 : i32
    %416 = vector.broadcast %c24_i32 : i32 to vector<1x32xi32>
    %417 = arith.cmpi slt, %397, %416 : vector<1x32xi32>
    %418 = arith.andi %415, %417 : vector<1x32xi1>
    %cst_88 = arith.constant 1.000000e+00 : f32
    %cst_89 = arith.constant 0.000000e+00 : f32
    %419 = vector.broadcast %cst_88 : f32 to vector<1x32xf32>
    %420 = vector.broadcast %cst_89 : f32 to vector<1x32xf32>
    %421 = arith.select %418, %419, %420 : vector<1x32xi1>, vector<1x32xf32>
    %c24_i32_90 = arith.constant 24 : i32
    %422 = vector.broadcast %c24_i32_90 : i32 to vector<1x32xi32>
    %423 = arith.cmpi sge, %397, %422 : vector<1x32xi32>
    %c32_i32 = arith.constant 32 : i32
    %424 = vector.broadcast %c32_i32 : i32 to vector<1x32xi32>
    %425 = arith.cmpi slt, %397, %424 : vector<1x32xi32>
    %426 = arith.andi %423, %425 : vector<1x32xi1>
    %cst_91 = arith.constant 1.000000e+00 : f32
    %cst_92 = arith.constant 0.000000e+00 : f32
    %427 = vector.broadcast %cst_91 : f32 to vector<1x32xf32>
    %428 = vector.broadcast %cst_92 : f32 to vector<1x32xf32>
    %429 = arith.select %426, %427, %428 : vector<1x32xi1>, vector<1x32xf32>
    %430 = vector.extract_strided_slice %394 {offsets = [0, 0], sizes = [3, 32], strides = [1, 1]} : vector<6x32xf32> to vector<3x32xf32>
    %431 = vector.extract_strided_slice %395 {offsets = [0, 0], sizes = [3, 32], strides = [1, 1]} : vector<6x32xf32> to vector<3x32xf32>
    %432 = vector.extract_strided_slice %396 {offsets = [0, 0], sizes = [3, 32], strides = [1, 1]} : vector<6x32xf32> to vector<3x32xf32>
    %cst_93 = arith.constant 0.000000e+00 : f32
    %433 = vector.broadcast %cst_93 : f32 to vector<3x32xf32>
    %434 = vector.broadcast %405 : vector<1x32xf32> to vector<3x32xf32>
    %435 = arith.mulf %430, %434 : vector<3x32xf32>
    %cst_94 = arith.constant dense<0.000000e+00> : vector<3x3xf32>
    %436 = tpu.matmul %435, %431, %cst_94 {dimension_numbers = #tpu.dot_dimension_numbers<[1], [1], [0], [0], [0, 0, 1, 0], [], []>} : vector<3x32xf32>, vector<3x32xf32>, vector<3x3xf32> -> vector<3x3xf32>
    %cst_95 = arith.constant 0.353553385 : f32
    %437 = vector.broadcast %cst_95 : f32 to vector<3x3xf32>
    %438 = arith.mulf %436, %437 : vector<3x3xf32>
    %cst_96 = arith.constant dense<0xFF800000> : vector<3xf32>
    %439 = vector.multi_reduction <maximumf>, %438, %cst_96 [1] : vector<3x3xf32> to vector<3xf32>
    %440 = vector.shape_cast %439 : vector<3xf32> to vector<3x1xf32>
    %441 = vector.broadcast %440 : vector<3x1xf32> to vector<3x3xf32>
    %442 = arith.subf %438, %441 : vector<3x3xf32>
    %443 = math.exp %442 : vector<3x3xf32>
    %cst_97 = arith.constant dense<0.000000e+00> : vector<3xf32>
    %444 = vector.multi_reduction <add>, %443, %cst_97 [1] : vector<3x3xf32> to vector<3xf32>
    %445 = vector.shape_cast %444 : vector<3xf32> to vector<3x1xf32>
    %446 = tpu.reciprocal %445 {approx = true} : vector<3x1xf32> -> vector<3x1xf32>
    %447 = vector.broadcast %446 : vector<3x1xf32> to vector<3x3xf32>
    %448 = arith.mulf %443, %447 : vector<3x3xf32>
    %449 = vector.broadcast %405 : vector<1x32xf32> to vector<3x32xf32>
    %450 = arith.mulf %432, %449 : vector<3x32xf32>
    %cst_98 = arith.constant dense<0.000000e+00> : vector<3x32xf32>
    %451 = tpu.matmul %448, %450, %cst_98 {dimension_numbers = #tpu.dot_dimension_numbers<[1], [0], [0], [1], [0, 0, 1, 1], [], []>} : vector<3x3xf32>, vector<3x32xf32>, vector<3x32xf32> -> vector<3x32xf32>
    %452 = arith.addf %433, %451 : vector<3x32xf32>
    %453 = vector.broadcast %413 : vector<1x32xf32> to vector<3x32xf32>
    %454 = arith.mulf %430, %453 : vector<3x32xf32>
    %cst_99 = arith.constant dense<0.000000e+00> : vector<3x3xf32>
    %455 = tpu.matmul %454, %431, %cst_99 {dimension_numbers = #tpu.dot_dimension_numbers<[1], [1], [0], [0], [0, 0, 1, 0], [], []>} : vector<3x32xf32>, vector<3x32xf32>, vector<3x3xf32> -> vector<3x3xf32>
    %cst_100 = arith.constant 0.353553385 : f32
    %456 = vector.broadcast %cst_100 : f32 to vector<3x3xf32>
    %457 = arith.mulf %455, %456 : vector<3x3xf32>
    %cst_101 = arith.constant dense<0xFF800000> : vector<3xf32>
    %458 = vector.multi_reduction <maximumf>, %457, %cst_101 [1] : vector<3x3xf32> to vector<3xf32>
    %459 = vector.shape_cast %458 : vector<3xf32> to vector<3x1xf32>
    %460 = vector.broadcast %459 : vector<3x1xf32> to vector<3x3xf32>
    %461 = arith.subf %457, %460 : vector<3x3xf32>
    %462 = math.exp %461 : vector<3x3xf32>
    %cst_102 = arith.constant dense<0.000000e+00> : vector<3xf32>
    %463 = vector.multi_reduction <add>, %462, %cst_102 [1] : vector<3x3xf32> to vector<3xf32>
    %464 = vector.shape_cast %463 : vector<3xf32> to vector<3x1xf32>
    %465 = tpu.reciprocal %464 {approx = true} : vector<3x1xf32> -> vector<3x1xf32>
    %466 = vector.broadcast %465 : vector<3x1xf32> to vector<3x3xf32>
    %467 = arith.mulf %462, %466 : vector<3x3xf32>
    %468 = vector.broadcast %413 : vector<1x32xf32> to vector<3x32xf32>
    %469 = arith.mulf %432, %468 : vector<3x32xf32>
    %cst_103 = arith.constant dense<0.000000e+00> : vector<3x32xf32>
    %470 = tpu.matmul %467, %469, %cst_103 {dimension_numbers = #tpu.dot_dimension_numbers<[1], [0], [0], [1], [0, 0, 1, 1], [], []>} : vector<3x3xf32>, vector<3x32xf32>, vector<3x32xf32> -> vector<3x32xf32>
    %471 = arith.addf %452, %470 : vector<3x32xf32>
    %472 = vector.broadcast %421 : vector<1x32xf32> to vector<3x32xf32>
    %473 = arith.mulf %430, %472 : vector<3x32xf32>
    %cst_104 = arith.constant dense<0.000000e+00> : vector<3x3xf32>
    %474 = tpu.matmul %473, %431, %cst_104 {dimension_numbers = #tpu.dot_dimension_numbers<[1], [1], [0], [0], [0, 0, 1, 0], [], []>} : vector<3x32xf32>, vector<3x32xf32>, vector<3x3xf32> -> vector<3x3xf32>
    %cst_105 = arith.constant 0.353553385 : f32
    %475 = vector.broadcast %cst_105 : f32 to vector<3x3xf32>
    %476 = arith.mulf %474, %475 : vector<3x3xf32>
    %cst_106 = arith.constant dense<0xFF800000> : vector<3xf32>
    %477 = vector.multi_reduction <maximumf>, %476, %cst_106 [1] : vector<3x3xf32> to vector<3xf32>
    %478 = vector.shape_cast %477 : vector<3xf32> to vector<3x1xf32>
    %479 = vector.broadcast %478 : vector<3x1xf32> to vector<3x3xf32>
    %480 = arith.subf %476, %479 : vector<3x3xf32>
    %481 = math.exp %480 : vector<3x3xf32>
    %cst_107 = arith.constant dense<0.000000e+00> : vector<3xf32>
    %482 = vector.multi_reduction <add>, %481, %cst_107 [1] : vector<3x3xf32> to vector<3xf32>
    %483 = vector.shape_cast %482 : vector<3xf32> to vector<3x1xf32>
    %484 = tpu.reciprocal %483 {approx = true} : vector<3x1xf32> -> vector<3x1xf32>
    %485 = vector.broadcast %484 : vector<3x1xf32> to vector<3x3xf32>
    %486 = arith.mulf %481, %485 : vector<3x3xf32>
    %487 = vector.broadcast %421 : vector<1x32xf32> to vector<3x32xf32>
    %488 = arith.mulf %432, %487 : vector<3x32xf32>
    %cst_108 = arith.constant dense<0.000000e+00> : vector<3x32xf32>
    %489 = tpu.matmul %486, %488, %cst_108 {dimension_numbers = #tpu.dot_dimension_numbers<[1], [0], [0], [1], [0, 0, 1, 1], [], []>} : vector<3x3xf32>, vector<3x32xf32>, vector<3x32xf32> -> vector<3x32xf32>
    %490 = arith.addf %471, %489 : vector<3x32xf32>
    %491 = vector.broadcast %429 : vector<1x32xf32> to vector<3x32xf32>
    %492 = arith.mulf %430, %491 : vector<3x32xf32>
    %cst_109 = arith.constant dense<0.000000e+00> : vector<3x3xf32>
    %493 = tpu.matmul %492, %431, %cst_109 {dimension_numbers = #tpu.dot_dimension_numbers<[1], [1], [0], [0], [0, 0, 1, 0], [], []>} : vector<3x32xf32>, vector<3x32xf32>, vector<3x3xf32> -> vector<3x3xf32>
    %cst_110 = arith.constant 0.353553385 : f32
    %494 = vector.broadcast %cst_110 : f32 to vector<3x3xf32>
    %495 = arith.mulf %493, %494 : vector<3x3xf32>
    %cst_111 = arith.constant dense<0xFF800000> : vector<3xf32>
    %496 = vector.multi_reduction <maximumf>, %495, %cst_111 [1] : vector<3x3xf32> to vector<3xf32>
    %497 = vector.shape_cast %496 : vector<3xf32> to vector<3x1xf32>
    %498 = vector.broadcast %497 : vector<3x1xf32> to vector<3x3xf32>
    %499 = arith.subf %495, %498 : vector<3x3xf32>
    %500 = math.exp %499 : vector<3x3xf32>
    %cst_112 = arith.constant dense<0.000000e+00> : vector<3xf32>
    %501 = vector.multi_reduction <add>, %500, %cst_112 [1] : vector<3x3xf32> to vector<3xf32>
    %502 = vector.shape_cast %501 : vector<3xf32> to vector<3x1xf32>
    %503 = tpu.reciprocal %502 {approx = true} : vector<3x1xf32> -> vector<3x1xf32>
    %504 = vector.broadcast %503 : vector<3x1xf32> to vector<3x3xf32>
    %505 = arith.mulf %500, %504 : vector<3x3xf32>
    %506 = vector.broadcast %429 : vector<1x32xf32> to vector<3x32xf32>
    %507 = arith.mulf %432, %506 : vector<3x32xf32>
    %cst_113 = arith.constant dense<0.000000e+00> : vector<3x32xf32>
    %508 = tpu.matmul %505, %507, %cst_113 {dimension_numbers = #tpu.dot_dimension_numbers<[1], [0], [0], [1], [0, 0, 1, 1], [], []>} : vector<3x3xf32>, vector<3x32xf32>, vector<3x32xf32> -> vector<3x32xf32>
    %509 = arith.addf %490, %508 : vector<3x32xf32>
    %510 = vector.extract_strided_slice %358 {offsets = [0, 0], sizes = [1, 32], strides = [1, 1]} : vector<3x32xf32> to vector<1x32xf32>
    %511 = vector.extract_strided_slice %387 {offsets = [0, 0], sizes = [1, 32], strides = [1, 1]} : vector<3x32xf32> to vector<1x32xf32>
    %512 = vector.extract_strided_slice %358 {offsets = [1, 0], sizes = [1, 32], strides = [1, 1]} : vector<3x32xf32> to vector<1x32xf32>
    %513 = tpu.concatenate %510, %511, %512 in 0 : vector<1x32xf32>, vector<1x32xf32>, vector<1x32xf32> -> vector<3x32xf32>
    %514 = arith.addf %513, %509 : vector<3x32xf32>
    %515 = vector.extract_strided_slice %394 {offsets = [3, 0], sizes = [3, 32], strides = [1, 1]} : vector<6x32xf32> to vector<3x32xf32>
    %516 = vector.extract_strided_slice %395 {offsets = [3, 0], sizes = [3, 32], strides = [1, 1]} : vector<6x32xf32> to vector<3x32xf32>
    %517 = vector.extract_strided_slice %396 {offsets = [3, 0], sizes = [3, 32], strides = [1, 1]} : vector<6x32xf32> to vector<3x32xf32>
    %cst_114 = arith.constant 0.000000e+00 : f32
    %518 = vector.broadcast %cst_114 : f32 to vector<3x32xf32>
    %519 = vector.broadcast %405 : vector<1x32xf32> to vector<3x32xf32>
    %520 = arith.mulf %515, %519 : vector<3x32xf32>
    %cst_115 = arith.constant dense<0.000000e+00> : vector<3x3xf32>
    %521 = tpu.matmul %520, %516, %cst_115 {dimension_numbers = #tpu.dot_dimension_numbers<[1], [1], [0], [0], [0, 0, 1, 0], [], []>} : vector<3x32xf32>, vector<3x32xf32>, vector<3x3xf32> -> vector<3x3xf32>
    %cst_116 = arith.constant 0.353553385 : f32
    %522 = vector.broadcast %cst_116 : f32 to vector<3x3xf32>
    %523 = arith.mulf %521, %522 : vector<3x3xf32>
    %cst_117 = arith.constant dense<0xFF800000> : vector<3xf32>
    %524 = vector.multi_reduction <maximumf>, %523, %cst_117 [1] : vector<3x3xf32> to vector<3xf32>
    %525 = vector.shape_cast %524 : vector<3xf32> to vector<3x1xf32>
    %526 = vector.broadcast %525 : vector<3x1xf32> to vector<3x3xf32>
    %527 = arith.subf %523, %526 : vector<3x3xf32>
    %528 = math.exp %527 : vector<3x3xf32>
    %cst_118 = arith.constant dense<0.000000e+00> : vector<3xf32>
    %529 = vector.multi_reduction <add>, %528, %cst_118 [1] : vector<3x3xf32> to vector<3xf32>
    %530 = vector.shape_cast %529 : vector<3xf32> to vector<3x1xf32>
    %531 = tpu.reciprocal %530 {approx = true} : vector<3x1xf32> -> vector<3x1xf32>
    %532 = vector.broadcast %531 : vector<3x1xf32> to vector<3x3xf32>
    %533 = arith.mulf %528, %532 : vector<3x3xf32>
    %534 = vector.broadcast %405 : vector<1x32xf32> to vector<3x32xf32>
    %535 = arith.mulf %517, %534 : vector<3x32xf32>
    %cst_119 = arith.constant dense<0.000000e+00> : vector<3x32xf32>
    %536 = tpu.matmul %533, %535, %cst_119 {dimension_numbers = #tpu.dot_dimension_numbers<[1], [0], [0], [1], [0, 0, 1, 1], [], []>} : vector<3x3xf32>, vector<3x32xf32>, vector<3x32xf32> -> vector<3x32xf32>
    %537 = arith.addf %518, %536 : vector<3x32xf32>
    %538 = vector.broadcast %413 : vector<1x32xf32> to vector<3x32xf32>
    %539 = arith.mulf %515, %538 : vector<3x32xf32>
    %cst_120 = arith.constant dense<0.000000e+00> : vector<3x3xf32>
    %540 = tpu.matmul %539, %516, %cst_120 {dimension_numbers = #tpu.dot_dimension_numbers<[1], [1], [0], [0], [0, 0, 1, 0], [], []>} : vector<3x32xf32>, vector<3x32xf32>, vector<3x3xf32> -> vector<3x3xf32>
    %cst_121 = arith.constant 0.353553385 : f32
    %541 = vector.broadcast %cst_121 : f32 to vector<3x3xf32>
    %542 = arith.mulf %540, %541 : vector<3x3xf32>
    %cst_122 = arith.constant dense<0xFF800000> : vector<3xf32>
    %543 = vector.multi_reduction <maximumf>, %542, %cst_122 [1] : vector<3x3xf32> to vector<3xf32>
    %544 = vector.shape_cast %543 : vector<3xf32> to vector<3x1xf32>
    %545 = vector.broadcast %544 : vector<3x1xf32> to vector<3x3xf32>
    %546 = arith.subf %542, %545 : vector<3x3xf32>
    %547 = math.exp %546 : vector<3x3xf32>
    %cst_123 = arith.constant dense<0.000000e+00> : vector<3xf32>
    %548 = vector.multi_reduction <add>, %547, %cst_123 [1] : vector<3x3xf32> to vector<3xf32>
    %549 = vector.shape_cast %548 : vector<3xf32> to vector<3x1xf32>
    %550 = tpu.reciprocal %549 {approx = true} : vector<3x1xf32> -> vector<3x1xf32>
    %551 = vector.broadcast %550 : vector<3x1xf32> to vector<3x3xf32>
    %552 = arith.mulf %547, %551 : vector<3x3xf32>
    %553 = vector.broadcast %413 : vector<1x32xf32> to vector<3x32xf32>
    %554 = arith.mulf %517, %553 : vector<3x32xf32>
    %cst_124 = arith.constant dense<0.000000e+00> : vector<3x32xf32>
    %555 = tpu.matmul %552, %554, %cst_124 {dimension_numbers = #tpu.dot_dimension_numbers<[1], [0], [0], [1], [0, 0, 1, 1], [], []>} : vector<3x3xf32>, vector<3x32xf32>, vector<3x32xf32> -> vector<3x32xf32>
    %556 = arith.addf %537, %555 : vector<3x32xf32>
    %557 = vector.broadcast %421 : vector<1x32xf32> to vector<3x32xf32>
    %558 = arith.mulf %515, %557 : vector<3x32xf32>
    %cst_125 = arith.constant dense<0.000000e+00> : vector<3x3xf32>
    %559 = tpu.matmul %558, %516, %cst_125 {dimension_numbers = #tpu.dot_dimension_numbers<[1], [1], [0], [0], [0, 0, 1, 0], [], []>} : vector<3x32xf32>, vector<3x32xf32>, vector<3x3xf32> -> vector<3x3xf32>
    %cst_126 = arith.constant 0.353553385 : f32
    %560 = vector.broadcast %cst_126 : f32 to vector<3x3xf32>
    %561 = arith.mulf %559, %560 : vector<3x3xf32>
    %cst_127 = arith.constant dense<0xFF800000> : vector<3xf32>
    %562 = vector.multi_reduction <maximumf>, %561, %cst_127 [1] : vector<3x3xf32> to vector<3xf32>
    %563 = vector.shape_cast %562 : vector<3xf32> to vector<3x1xf32>
    %564 = vector.broadcast %563 : vector<3x1xf32> to vector<3x3xf32>
    %565 = arith.subf %561, %564 : vector<3x3xf32>
    %566 = math.exp %565 : vector<3x3xf32>
    %cst_128 = arith.constant dense<0.000000e+00> : vector<3xf32>
    %567 = vector.multi_reduction <add>, %566, %cst_128 [1] : vector<3x3xf32> to vector<3xf32>
    %568 = vector.shape_cast %567 : vector<3xf32> to vector<3x1xf32>
    %569 = tpu.reciprocal %568 {approx = true} : vector<3x1xf32> -> vector<3x1xf32>
    %570 = vector.broadcast %569 : vector<3x1xf32> to vector<3x3xf32>
    %571 = arith.mulf %566, %570 : vector<3x3xf32>
    %572 = vector.broadcast %421 : vector<1x32xf32> to vector<3x32xf32>
    %573 = arith.mulf %517, %572 : vector<3x32xf32>
    %cst_129 = arith.constant dense<0.000000e+00> : vector<3x32xf32>
    %574 = tpu.matmul %571, %573, %cst_129 {dimension_numbers = #tpu.dot_dimension_numbers<[1], [0], [0], [1], [0, 0, 1, 1], [], []>} : vector<3x3xf32>, vector<3x32xf32>, vector<3x32xf32> -> vector<3x32xf32>
    %575 = arith.addf %556, %574 : vector<3x32xf32>
    %576 = vector.broadcast %429 : vector<1x32xf32> to vector<3x32xf32>
    %577 = arith.mulf %515, %576 : vector<3x32xf32>
    %cst_130 = arith.constant dense<0.000000e+00> : vector<3x3xf32>
    %578 = tpu.matmul %577, %516, %cst_130 {dimension_numbers = #tpu.dot_dimension_numbers<[1], [1], [0], [0], [0, 0, 1, 0], [], []>} : vector<3x32xf32>, vector<3x32xf32>, vector<3x3xf32> -> vector<3x3xf32>
    %cst_131 = arith.constant 0.353553385 : f32
    %579 = vector.broadcast %cst_131 : f32 to vector<3x3xf32>
    %580 = arith.mulf %578, %579 : vector<3x3xf32>
    %cst_132 = arith.constant dense<0xFF800000> : vector<3xf32>
    %581 = vector.multi_reduction <maximumf>, %580, %cst_132 [1] : vector<3x3xf32> to vector<3xf32>
    %582 = vector.shape_cast %581 : vector<3xf32> to vector<3x1xf32>
    %583 = vector.broadcast %582 : vector<3x1xf32> to vector<3x3xf32>
    %584 = arith.subf %580, %583 : vector<3x3xf32>
    %585 = math.exp %584 : vector<3x3xf32>
    %cst_133 = arith.constant dense<0.000000e+00> : vector<3xf32>
    %586 = vector.multi_reduction <add>, %585, %cst_133 [1] : vector<3x3xf32> to vector<3xf32>
    %587 = vector.shape_cast %586 : vector<3xf32> to vector<3x1xf32>
    %588 = tpu.reciprocal %587 {approx = true} : vector<3x1xf32> -> vector<3x1xf32>
    %589 = vector.broadcast %588 : vector<3x1xf32> to vector<3x3xf32>
    %590 = arith.mulf %585, %589 : vector<3x3xf32>
    %591 = vector.broadcast %429 : vector<1x32xf32> to vector<3x32xf32>
    %592 = arith.mulf %517, %591 : vector<3x32xf32>
    %cst_134 = arith.constant dense<0.000000e+00> : vector<3x32xf32>
    %593 = tpu.matmul %590, %592, %cst_134 {dimension_numbers = #tpu.dot_dimension_numbers<[1], [0], [0], [1], [0, 0, 1, 1], [], []>} : vector<3x3xf32>, vector<3x32xf32>, vector<3x32xf32> -> vector<3x32xf32>
    %594 = arith.addf %575, %593 : vector<3x32xf32>
    %595 = vector.extract_strided_slice %387 {offsets = [1, 0], sizes = [1, 32], strides = [1, 1]} : vector<3x32xf32> to vector<1x32xf32>
    %596 = vector.extract_strided_slice %358 {offsets = [2, 0], sizes = [1, 32], strides = [1, 1]} : vector<3x32xf32> to vector<1x32xf32>
    %597 = vector.extract_strided_slice %387 {offsets = [2, 0], sizes = [1, 32], strides = [1, 1]} : vector<3x32xf32> to vector<1x32xf32>
    %598 = tpu.concatenate %595, %596, %597 in 0 : vector<1x32xf32>, vector<1x32xf32>, vector<1x32xf32> -> vector<3x32xf32>
    %599 = arith.addf %598, %594 : vector<3x32xf32>
    %600 = tpu.concatenate %514, %599 in 0 : vector<3x32xf32>, vector<3x32xf32> -> vector<6x32xf32>
    %c0_135 = arith.constant 0 : index
    %c0_136 = arith.constant 0 : index
    %601 = vector.load %arg10[%c0_135, %c0_136] : memref<32x128xf32, #tpu.memory_space<vmem>>, vector<32x128xf32>
    %cst_137 = arith.constant dense<0.000000e+00> : vector<6x128xf32>
    %602 = tpu.matmul %600, %601, %cst_137 {dimension_numbers = #tpu.dot_dimension_numbers<[1], [0], [0], [1], [0, 0, 1, 1], [], []>} : vector<6x32xf32>, vector<32x128xf32>, vector<6x128xf32> -> vector<6x128xf32>
    %c0_138 = arith.constant 0 : index
    %c0_139 = arith.constant 0 : index
    %603 = vector.load %arg11[%c0_138, %c0_139] : memref<1x128xf32, #tpu.memory_space<vmem>>, vector<1x128xf32>
    %604 = vector.broadcast %603 : vector<1x128xf32> to vector<6x128xf32>
    %605 = arith.addf %602, %604 : vector<6x128xf32>
    %cst_140 = arith.constant 0.000000e+00 : f32
    %606 = vector.broadcast %cst_140 : f32 to vector<6x128xf32>
    %607 = arith.maximumf %605, %606 : vector<6x128xf32>
    %c0_141 = arith.constant 0 : index
    %c0_142 = arith.constant 0 : index
    %608 = vector.load %arg12[%c0_141, %c0_142] : memref<128x32xf32, #tpu.memory_space<vmem>>, vector<128x32xf32>
    %cst_143 = arith.constant dense<0.000000e+00> : vector<6x32xf32>
    %609 = tpu.matmul %607, %608, %cst_143 {dimension_numbers = #tpu.dot_dimension_numbers<[1], [0], [0], [1], [0, 0, 1, 1], [], []>} : vector<6x128xf32>, vector<128x32xf32>, vector<6x32xf32> -> vector<6x32xf32>
    %c0_144 = arith.constant 0 : index
    %c0_145 = arith.constant 0 : index
    %610 = vector.load %arg13[%c0_144, %c0_145] : memref<1x32xf32, #tpu.memory_space<vmem>>, vector<1x32xf32>
    %611 = vector.broadcast %610 : vector<1x32xf32> to vector<6x32xf32>
    %612 = arith.addf %609, %611 : vector<6x32xf32>
    %613 = arith.addf %600, %612 : vector<6x32xf32>
    %614 = math.tanh %613 : vector<6x32xf32>
    %c0_146 = arith.constant 0 : index
    %c0_147 = arith.constant 0 : index
    %615 = vector.load %arg14[%c0_146, %c0_147] : memref<32x1xf32, #tpu.memory_space<vmem>>, vector<32x1xf32>
    %cst_148 = arith.constant dense<0.000000e+00> : vector<6x1xf32>
    %616 = tpu.matmul %614, %615, %cst_148 {dimension_numbers = #tpu.dot_dimension_numbers<[1], [0], [0], [1], [0, 0, 1, 1], [], []>} : vector<6x32xf32>, vector<32x1xf32>, vector<6x1xf32> -> vector<6x1xf32>
    %c0_149 = arith.constant 0 : index
    %c0_150 = arith.constant 0 : index
    %617 = vector.load %arg15[%c0_149, %c0_150] : memref<1x1xf32, #tpu.memory_space<vmem>>, vector<1x1xf32>
    %618 = vector.broadcast %617 : vector<1x1xf32> to vector<6x1xf32>
    %619 = arith.addf %616, %618 : vector<6x1xf32>
    %c0_151 = arith.constant 0 : index
    %c0_152 = arith.constant 0 : index
    %620 = vector.load %arg16[%c0_151, %c0_152] : memref<6x1xf32, #tpu.memory_space<vmem>>, vector<6x1xf32>
    tpu.vector_store %arg16[%c0_151, %c0_152], %619 {strides = array<i32>} : memref<6x1xf32, #tpu.memory_space<vmem>>, vector<6x1xf32>,
    return
  }
}

</mosaic_0001>

<bundles_post_ra>
// kernel: _lambda_.1
= control target key start
LH: loop header
LB: loop body
LE: loop exit
PB: predicated region body
PF: predicated region fallthrough
CT: control target
= control target key end

     0   :  { %vm93_vm0 = vcmask 1043456   ;;  %vm68_vm1 = vcmask 31744   ;;  %v1944_v17 = vmov 0.0   ;;  %vm154_vm2 = vcmask 261120   ;;  %s1945_s26 = smov 64   ;;  %s2538_s1 = inlined_call_operand.vmem [shape: f32[4,32], index: 1, kind: input, shape index: {}]   ;;  %s2539_s0 = inlined_call_operand.vmem [shape: f32[64,4], index: 0, kind: input, shape index: {}]   ;;  %s2540_s4 = inlined_call_operand.vmem [shape: f32[1,32,128], index: 4, kind: input, shape index: {}]   ;;  %s2541_s2 = inlined_call_operand.vmem [shape: f32[1,32], index: 2, kind: input, shape index: {}]   ;;  %s2542_s3 = inlined_call_operand.vmem [shape: f32[1,32,128], index: 3, kind: input, shape index: {}]   ;;  %s2543_s5 = inlined_call_operand.vmem [shape: f32[1,1,128], index: 5, kind: input, shape index: {}]   ;;  %s2544_s9 = inlined_call_operand.vmem [shape: f32[1,96], index: 9, kind: input, shape index: {}]   ;;  %s2545_s8 = inlined_call_operand.vmem [shape: f32[32,96], index: 8, kind: input, shape index: {}]   ;;  %s2546_s6 = inlined_call_operand.vmem [shape: f32[4,32], index: 6, kind: input, shape index: {}]   ;;  %s2547_s7 = inlined_call_operand.vmem [shape: f32[4,32], index: 7, kind: input, shape index: {}]   ;;  %s2548_s11 = inlined_call_operand.vmem [shape: f32[1,128], index: 11, kind: input, shape index: {}]   ;;  %s2549_s10 = inlined_call_operand.vmem [shape: f32[32,128], index: 10, kind: input, shape index: {}]   ;;  %s2550_s12 = inlined_call_operand.vmem [shape: f32[128,32], index: 12, kind: input, shape index: {}]   ;;  %s2551_s13 = inlined_call_operand.vmem [shape: f32[1,32], index: 13, kind: input, shape index: {}]   ;;  %s2552_s14 = inlined_call_operand.vmem [shape: f32[32,1], index: 14, kind: input, shape index: {}]   ;;  %s2553_s15 = inlined_call_operand.<no memory space> [shape: f32[1,1], index: 15, kind: input, shape index: {}]   ;;  %s2554_s16 = inlined_call_operand.vmem [shape: f32[6,1], index: 16, kind: output, shape index: {}]  }
   0x1   :  { %2555 = sst [smem:[#allocation3_spill]] %s2538_s1  ;;  %v55_v1 = vld [vmem:[%s2539_s0] sm:$0xff]  ;;  %v2042_v2 = vld [vmem:[%s2540_s4 + $0x18] sm:$0xff]  ;;  %v2050_v3 = vld [vmem:[%s2540_s4 + $0x10] sm:$0xff] }
   0x2   :  { %s2556_s23 = sld [smem:[#allocation3_spill]]  ;;  %302 = vmatpush.msra.mxu3 %v2042_v2  ;;  %491 = vmatpush.msra.mxu2 %v2042_v2  ;;  %v2058_v4 = vld [vmem:[%s2540_s4 + $0x8] sm:$0xff]  ;;  %v57_v6 = vld [vmem:[%s2539_s0 + $0x10] sm:$0xff]  ;;  %v58_v7 = vld [vmem:[%s2539_s0 + $0x18] sm:$0xff] }
   0x3   :  { %v56_v5 = vld [vmem:[%s2539_s0 + $0x8] sm:$0xff]  ;;  %v59_v8 = vld [vmem:[%s2539_s0 + $0x20] sm:$0xff]  ;;  %v61_v10 = vld [vmem:[%s2539_s0 + $0x30] sm:$0xff] }
   0x4   :  { %303 = vmatpush.msra.mxu3 %v2050_v3  ;;  %492 = vmatpush.msra.mxu2 %v2050_v3  ;;  %v60_v9 = vld [vmem:[%s2539_s0 + $0x28] sm:$0xff]  ;;  %v149_v11 = vld [vmem:[%s2542_s3 + $0x18] sm:$0xff]  ;;  %v2095_v12 = vld [vmem:[%s2540_s4] sm:$0xff] }
   0x5   :  { %191 = vmatpush.msra.mxu1 %v149_v11  ;;  %v62_v13 = vld [vmem:[%s2539_s0 + $0x38] sm:$0xff]  ;;  %v148_v14 = vld [vmem:[%s2542_s3 + $0x10] sm:$0xff]  ;;  %v147_v15 = vld [vmem:[%s2542_s3 + $0x8] sm:$0xff] }
   0x6   :  { %304 = vmatpush.msra.mxu3 %v2058_v4  ;;  %493 = vmatpush.msra.mxu2 %v2058_v4  ;;  %v146_v16 = vld [vmem:[%s2542_s3] sm:$0xff] }
   0x7   :  { %192 = vmatpush.msra.mxu1 %v148_v14  ;;  %v1798_v18 = vld [vmem:[%s2541_s2] ss:$0 sm:$0xff] }
   0x8   :  { %v63_v0 = vld [vmem:[%s2556_s23] sm:$0xf]  ;;  %305 = vmatpush.msra.mxu3 %v2095_v12  ;;  %494 = vmatpush.msra.mxu2 %v2095_v12 }
   0x9   :  { %1727 = vmatpush.msk.msra.mxu0 %vm93_vm0, %v63_v0  ;;  %193 = vmatpush.msra.mxu1 %v147_v15  ;;  %v2140_v43 = vld [vmem:[%s2543_s5] ss:$0 sm:$0xff]  ;;  %s1946_s5 = smov 32  }
   0xa   :  { %1728 = vmatmul.msk.f32.vlgmr.msra.gmra.mxu0 %vm68_vm1, %v55_v1  ;;  %428 = vmatpush.msrb.mxu3 %v2042_v2 }
   0xb   :  { %239 = vmatpush.msrb.mxu0 %v2042_v2  ;;  %617 = vmatpush.msrb.mxu2 %v2042_v2 }
   0xc   :  { %429 = vmatpush.msrb.mxu3 %v2050_v3  ;;  %194 = vmatpush.msra.mxu1 %v146_v16 }
   0xd   :  { %240 = vmatpush.msrb.mxu0 %v2050_v3  ;;  %618 = vmatpush.msrb.mxu2 %v2050_v3 }
   0xe   :  { %365 = vmatpush.msrb.mxu1 %v2042_v2  ;;  %430 = vmatpush.msrb.mxu3 %v2058_v4 }
   0xf   :  { %241 = vmatpush.msrb.mxu0 %v2058_v4  ;;  %619 = vmatpush.msrb.mxu2 %v2058_v4 }
  0x10   :  { %366 = vmatpush.msrb.mxu1 %v2050_v3  ;;  %431 = vmatpush.msrb.mxu3 %v2095_v12 }
  0x11   :  { %242 = vmatpush.msrb.mxu0 %v2095_v12  ;;  %620 = vmatpush.msrb.mxu2 %v2095_v12 }
  0x12   :  { %1729 = vmatmul.msk.f32.gmra.mxu0 %vm68_vm1, %v56_v5  ;;  %367 = vmatpush.msrb.mxu1 %v2058_v4 }
  0x14   :  { %368 = vmatpush.msrb.mxu1 %v2095_v12 }
  0x1a   :  { %1730 = vmatmul.msk.f32.gmra.mxu0 %vm68_vm1, %v57_v6 }
  0x22   :  { %1731 = vmatmul.msk.f32.gmra.mxu0 %vm68_vm1, %v58_v7 }
  0x2a   :  { %1732 = vmatmul.msk.f32.gmra.mxu0 %vm68_vm1, %v59_v8 }
  0x32   :  { %1733 = vmatmul.msk.f32.gmra.mxu0 %vm68_vm1, %v60_v9 }
  0x3a   :  { %1734 = vmatmul.msk.f32.gmra.mxu0 %vm68_vm1, %v61_v10 }
  0x42   :  { %1735 = vmatmul.msk.f32.gmra.mxu0 %vm68_vm1, %v62_v13 }
  0x4a   :  { %243 = vmatmul.f32.vlgmr.msrb.gmra.mxu0 %v1944_v17 }
  0x87   :  { %v114_v19 = vpop.f32.mrf.mxu0 }
  0x88   :  { %v115_v20 = vadd.f32 %v1798_v18, %v114_v19 }
  0x8a   :  { %1804 = vtanh.f32 %v115_v20 }
  0x8f   :  { %v117_v21 = vpop.f32.mrf.mxu0 }
  0x90   :  { %v1805_v22 = vpop.eup %1804  ;;  %v118_v23 = vadd.f32 %v1798_v18, %v117_v21 }
  0x91   :  { %1736 = vmatmul.msk.f32.vlgmr.msra.gmra.mxu1 %vm154_vm2, %v1805_v22 }
  0x92   :  { %1806 = vtanh.f32 %v118_v23 }
  0x97   :  { %v120_v24 = vpop.f32.mrf.mxu0 }
  0x98   :  { %v1807_v25 = vpop.eup %1806  ;;  %v121_v26 = vadd.f32 %v1798_v18, %v120_v24 }
  0x99   :  { %1737 = vmatmul.msk.f32.gmra.mxu1 %vm154_vm2, %v1807_v25 }
  0x9a   :  { %1808 = vtanh.f32 %v121_v26 }
  0x9f   :  { %v123_v27 = vpop.f32.mrf.mxu0 }
  0xa0   :  { %v1809_v28 = vpop.eup %1808  ;;  %v124_v29 = vadd.f32 %v1798_v18, %v123_v27 }
  0xa1   :  { %1738 = vmatmul.msk.f32.gmra.mxu1 %vm154_vm2, %v1809_v28 }
  0xa2   :  { %1810 = vtanh.f32 %v124_v29 }
  0xa7   :  { %v126_v30 = vpop.f32.mrf.mxu0 }
  0xa8   :  { %v1811_v31 = vpop.eup %1810  ;;  %v127_v32 = vadd.f32 %v1798_v18, %v126_v30 }
  0xa9   :  { %1739 = vmatmul.msk.f32.gmra.mxu1 %vm154_vm2, %v1811_v31 }
  0xaa   :  { %1812 = vtanh.f32 %v127_v32 }
  0xaf   :  { %v129_v33 = vpop.f32.mrf.mxu0 }
  0xb0   :  { %v1813_v34 = vpop.eup %1812  ;;  %v130_v35 = vadd.f32 %v1798_v18, %v129_v33 }
  0xb1   :  { %1740 = vmatmul.msk.f32.gmra.mxu1 %vm154_vm2, %v1813_v34 }
  0xb2   :  { %1814 = vtanh.f32 %v130_v35 }
  0xb7   :  { %v132_v36 = vpop.f32.mrf.mxu0 }
  0xb8   :  { %v1815_v37 = vpop.eup %1814  ;;  %v133_v38 = vadd.f32 %v1798_v18, %v132_v36 }
  0xb9   :  { %1741 = vmatmul.msk.f32.gmra.mxu1 %vm154_vm2, %v1815_v37 }
  0xba   :  { %1816 = vtanh.f32 %v133_v38 }
  0xbf   :  { %v135_v40 = vpop.f32.mrf.mxu0 }
  0xc0   :  { %v1817_v39 = vpop.eup %1816  ;;  %v136_v41 = vadd.f32 %v1798_v18, %v135_v40 }
  0xc1   :  { %1742 = vmatmul.msk.f32.gmra.mxu1 %vm154_vm2, %v1817_v39 }
  0xc2   :  { %1818 = vtanh.f32 %v136_v41 }
  0xc7   :  { %v244_v45 = vpop.f32.mrf.mxu0 }
  0xc8   :  { %v1819_v42 = vpop.eup %1818 }
  0xc9   :  { %1743 = vmatmul.msk.f32.gmra.mxu1 %vm154_vm2, %v1819_v42 }
 0x10e   :  { %v196_v44 = vpop.f32.mrf.mxu1 }
 0x10f   :  { %v197_v46 = vadd.f32 %v2140_v43, %v196_v44 }
 0x111   :  { %v247_v47 = vadd.f32 %v244_v45, %v197_v46 }
 0x113   :  { %1820 = vtanh.f32 %v247_v47  ;;  %v1744_v49 = vmul.f32 -1.442695, %v247_v47 }
 0x115   :  { %1822 = vpow2.f32 %v1744_v49 }
 0x116   :  { %v199_v10 = vpop.f32.mrf.mxu1 }
 0x117   :  { %v200_v11 = vadd.f32 %v2140_v43, %v199_v10 }
 0x119   :  { %v1821_v48 = vpop.eup %1820 }
 0x11a   :  { %270 = vrot.lane.b32.xlu0 %v1821_v48, %s1945_s26 }
 0x11b   :  { %v1823_v50 = vpop.eup %1822 }
 0x11c   :  { %v251_v51 = vadd.f32 1.0, %v1823_v50 }
 0x11e   :  { %1824 = vrcp.f32 %v251_v51  ;;  %v263_v57 = vand.u32 2147483648, %v251_v51  ;;  %vm257_vm4 = vweird.f32 %v251_v51  ;;  %v261_v58 = vand.u32 2147483647, %v251_v51  ;;  %v202_v39 = vpop.f32.mrf.mxu1 }
 0x11f   :  { %v203_v46 = vadd.f32 %v2140_v43, %v202_v39 }
 0x120   :  { %v264_v60 = vor.u32 1.1754944e-38, %v263_v57  ;;  %vm262_vm6 = vcmp.eq.f32.partialorder %v261_v58, 8.507059e+37 }
 0x124   :  { %v1825_v52 = vpop.eup %1824 }
 0x125   :  { %v253_v53 = vmul.f32 %v1825_v52, %v251_v51  ;;  %vm258_vm3 = vweird.f32 %v1825_v52 }
 0x126   :  { %vm259_vm5 = vmor %vm257_vm4, %vm258_vm3  ;;  %v205_v40 = vpop.f32.mrf.mxu1 }
 0x127   :  { %v254_v54 = vsub.f32 1.0, %v253_v53 }
 0x129   :  { %v255_v55 = vmul.f32 %v1825_v52, %v254_v54 }
 0x12b   :  { %v256_v56 = vadd.f32 %v1825_v52, %v255_v55 }
 0x12d   :  { %v260_v59 = vsel %vm259_vm5, %v1825_v52, %v256_v56 }
 0x12e   :  { %v265_v62 = vsel %vm262_vm6, %v264_v60, %v260_v59  ;;  %v2164_v41 = vpop.f32.mrf.mxu1 }
 0x12f   :  { %v268_v0 = vmul.f32 0.0, %v265_v62 }
 0x136   :  { %v2166_v42 = vpop.f32.mrf.mxu1 }
 0x13e   :  { %v2168_v44 = vpop.f32.mrf.mxu1 }
 0x146   :  { %v2170_v45 = vpop.f32.mrf.mxu1 }
 0x18c   :  { %v271_v61 = vpop.permute.xlu0 %270 }
 0x18d   :  { %v273_v63 = vmul.f32 %v271_v61, %v265_v62 }
 0x18f   :  { %275 = vrot.lane.b32.xlu0 %v273_v63, %s1946_s5 }
 0x201   :  { %v276_v1 = vpop.permute.xlu0 %275 }
 0x202   :  { %v278_v5 = vadd.f32 %v276_v1, %v268_v0 }
 0x204   :  { %1826 = vtanh.f32 %v278_v5 }
 0x20a   :  { %v1827_v6 = vpop.eup %1826 }
 0x20b   :  { %281 = vrot.lane.b32.xlu1 %v1827_v6, %s1945_s26 }
 0x27d   :  { %v282_v7 = vpop.permute.xlu1 %281 }
 0x27e   :  { %v2146_v8 = vmul.f32 %v282_v7, %v265_v62 }
 0x280   :  { %286 = vrot.lane.b32.xlu1 %v2146_v8, %s1946_s5 }
 0x2f2   :  { %v287_v9 = vpop.permute.xlu1 %286 }
 0x2f3   :  { %1745 = vmatmul.msk.f32.vlgmr.msra.gmra.mxu3 %vm154_vm2, %v287_v9 }
 0x2f4   :  { %554 = vmatpush.msra.mxu3 %v2042_v2 }
 0x2f6   :  { %555 = vmatpush.msra.mxu3 %v2050_v3 }
 0x2f8   :  { %556 = vmatpush.msra.mxu3 %v2058_v4 }
 0x2fa   :  { %557 = vmatpush.msra.mxu3 %v2095_v12 }
 0x376   :  { %v307_v13 = vpop.f32.mrf.mxu3 }
 0x377   :  { %v310_v14 = vadd.f32 %v307_v13, %v200_v11  ;;  %v206_v13 = vadd.f32 %v2140_v43, %v205_v40 }
 0x379   :  { %1828 = vtanh.f32 %v310_v14  ;;  %v1746_v16 = vmul.f32 -1.442695, %v310_v14 }
 0x37b   :  { %1830 = vpow2.f32 %v1746_v16 }
 0x37f   :  { %v1829_v15 = vpop.eup %1828 }
 0x380   :  { %333 = vrot.lane.b32.xlu2 %v1829_v15, %s1945_s26 }
 0x381   :  { %v1831_v18 = vpop.eup %1830 }
 0x382   :  { %v314_v19 = vadd.f32 1.0, %v1831_v18 }
 0x384   :  { %1832 = vrcp.f32 %v314_v19  ;;  %v326_v25 = vand.u32 2147483648, %v314_v19  ;;  %vm320_vm8 = vweird.f32 %v314_v19  ;;  %v324_v26 = vand.u32 2147483647, %v314_v19 }
 0x386   :  { %v327_v28 = vor.u32 1.1754944e-38, %v326_v25  ;;  %vm325_vm10 = vcmp.eq.f32.partialorder %v324_v26, 8.507059e+37 }
 0x38a   :  { %v1833_v20 = vpop.eup %1832 }
 0x38b   :  { %v316_v21 = vmul.f32 %v1833_v20, %v314_v19  ;;  %vm321_vm7 = vweird.f32 %v1833_v20 }
 0x38c   :  { %vm322_vm9 = vmor %vm320_vm8, %vm321_vm7 }
 0x38d   :  { %v317_v22 = vsub.f32 1.0, %v316_v21 }
 0x38f   :  { %v318_v23 = vmul.f32 %v1833_v20, %v317_v22 }
 0x391   :  { %v319_v24 = vadd.f32 %v1833_v20, %v318_v23 }
 0x393   :  { %v323_v27 = vsel %vm322_vm9, %v1833_v20, %v319_v24 }
 0x394   :  { %v328_v30 = vsel %vm325_vm10, %v327_v28, %v323_v27 }
 0x395   :  { %v331_v32 = vmul.f32 %v328_v30, %v278_v5 }
 0x3da   :  { %v334_v29 = vpop.permute.xlu2 %333 }
 0x3db   :  { %v336_v31 = vmul.f32 %v334_v29, %v328_v30 }
 0x3dd   :  { %338 = vrot.lane.b32.xlu2 %v336_v31, %s1946_s5 }
 0x437   :  { %v339_v33 = vpop.permute.xlu2 %338 }
 0x438   :  { %v341_v34 = vadd.f32 %v339_v33, %v331_v32 }
 0x43a   :  { %1834 = vtanh.f32 %v341_v34 }
 0x440   :  { %v1835_v35 = vpop.eup %1834 }
 0x441   :  { %344 = vrot.lane.b32.xlu0 %v1835_v35, %s1945_s26 }
 0x4b3   :  { %v345_v36 = vpop.permute.xlu0 %344 }
 0x4b4   :  { %v2159_v37 = vmul.f32 %v345_v36, %v328_v30  ;;  %v209_v36 = vadd.f32 %v2140_v43, %v2164_v41 }
 0x4b6   :  { %349 = vrot.lane.b32.xlu1 %v2159_v37, %s1946_s5 }
 0x528   :  { %v350_v38 = vpop.permute.xlu1 %349 }
 0x529   :  { %1747 = vmatmul.msk.f32.vlgmr.msrb.gmra.mxu1 %vm154_vm2, %v350_v38 }
 0x5a6   :  { %v370_v47 = vpop.f32.mrf.mxu1 }
 0x5a7   :  { %v373_v48 = vadd.f32 %v370_v47, %v203_v46 }
 0x5a9   :  { %1836 = vtanh.f32 %v373_v48  ;;  %v1748_v50 = vmul.f32 -1.442695, %v373_v48 }
 0x5ab   :  { %1838 = vpow2.f32 %v1748_v50 }
 0x5af   :  { %v1837_v49 = vpop.eup %1836 }
 0x5b0   :  { %396 = vrot.lane.b32.xlu2 %v1837_v49, %s1945_s26 }
 0x5b1   :  { %v1839_v51 = vpop.eup %1838 }
 0x5b2   :  { %v377_v52 = vadd.f32 1.0, %v1839_v51 }
 0x5b4   :  { %1840 = vrcp.f32 %v377_v52  ;;  %v389_v58 = vand.u32 2147483648, %v377_v52  ;;  %vm383_vm12 = vweird.f32 %v377_v52  ;;  %v387_v59 = vand.u32 2147483647, %v377_v52 }
 0x5b6   :  { %v390_v61 = vor.u32 1.1754944e-38, %v389_v58  ;;  %vm388_vm14 = vcmp.eq.f32.partialorder %v387_v59, 8.507059e+37 }
 0x5ba   :  { %v1841_v53 = vpop.eup %1840 }
 0x5bb   :  { %v379_v54 = vmul.f32 %v1841_v53, %v377_v52  ;;  %vm384_vm11 = vweird.f32 %v1841_v53 }
 0x5bc   :  { %vm385_vm13 = vmor %vm383_vm12, %vm384_vm11 }
 0x5bd   :  { %v380_v55 = vsub.f32 1.0, %v379_v54 }
 0x5bf   :  { %v381_v56 = vmul.f32 %v1841_v53, %v380_v55 }
 0x5c1   :  { %v382_v57 = vadd.f32 %v1841_v53, %v381_v56 }
 0x5c3   :  { %v386_v60 = vsel %vm385_vm13, %v1841_v53, %v382_v57 }
 0x5c4   :  { %v391_v63 = vsel %vm388_vm14, %v390_v61, %v386_v60 }
 0x5c5   :  { %v394_v1 = vmul.f32 %v391_v63, %v341_v34 }
 0x60a   :  { %v397_v62 = vpop.permute.xlu2 %396 }
 0x60b   :  { %v399_v0 = vmul.f32 %v397_v62, %v391_v63 }
 0x60d   :  { %401 = vrot.lane.b32.xlu0 %v399_v0, %s1946_s5 }
 0x67f   :  { %v402_v5 = vpop.permute.xlu0 %401 }
 0x680   :  { %v404_v6 = vadd.f32 %v402_v5, %v394_v1 }
 0x682   :  { %1842 = vtanh.f32 %v404_v6 }
 0x688   :  { %v1843_v7 = vpop.eup %1842 }
 0x689   :  { %407 = vrot.lane.b32.xlu1 %v1843_v7, %s1945_s26 }
 0x6fb   :  { %v408_v9 = vpop.permute.xlu1 %407 }
 0x6fc   :  { %v2176_v10 = vmul.f32 %v408_v9, %v391_v63 }
 0x6fe   :  { %412 = vrot.lane.b32.xlu2 %v2176_v10, %s1946_s5 }
 0x758   :  { %v413_v11 = vpop.permute.xlu2 %412 }
 0x759   :  { %1749 = vmatmul.msk.f32.vlgmr.msrb.gmra.mxu3 %vm154_vm2, %v413_v11 }
 0x75a   :  { %680 = vmatpush.msrb.mxu3 %v2042_v2 }
 0x75c   :  { %681 = vmatpush.msrb.mxu3 %v2050_v3 }
 0x75e   :  { %682 = vmatpush.msrb.mxu3 %v2058_v4 }
 0x760   :  { %683 = vmatpush.msrb.mxu3 %v2095_v12 }
 0x7dc   :  { %v433_v14 = vpop.f32.mrf.mxu3 }
 0x7dd   :  { %v436_v15 = vadd.f32 %v433_v14, %v206_v13 }
 0x7df   :  { %1844 = vtanh.f32 %v436_v15  ;;  %v1750_v18 = vmul.f32 -1.442695, %v436_v15 }
 0x7e1   :  { %1846 = vpow2.f32 %v1750_v18 }
 0x7e5   :  { %v1845_v16 = vpop.eup %1844 }
 0x7e6   :  { %459 = vrot.lane.b32.xlu0 %v1845_v16, %s1945_s26 }
 0x7e7   :  { %v1847_v19 = vpop.eup %1846 }
 0x7e8   :  { %v440_v20 = vadd.f32 1.0, %v1847_v19 }
 0x7ea   :  { %1848 = vrcp.f32 %v440_v20  ;;  %v452_v12 = vand.u32 2147483648, %v440_v20  ;;  %vm446_vm1 = vweird.f32 %v440_v20  ;;  %v450_v23 = vand.u32 2147483647, %v440_v20 }
 0x7ec   :  { %v453_v25 = vor.u32 1.1754944e-38, %v452_v12  ;;  %vm451_vm4 = vcmp.eq.f32.partialorder %v450_v23, 8.507059e+37 }
 0x7f0   :  { %v1849_v2 = vpop.eup %1848 }
 0x7f1   :  { %v442_v21 = vmul.f32 %v1849_v2, %v440_v20  ;;  %vm447_vm15 = vweird.f32 %v1849_v2 }
 0x7f2   :  { %vm448_vm3 = vmor %vm446_vm1, %vm447_vm15 }
 0x7f3   :  { %v443_v3 = vsub.f32 1.0, %v442_v21 }
 0x7f5   :  { %v444_v22 = vmul.f32 %v1849_v2, %v443_v3 }
 0x7f7   :  { %v445_v4 = vadd.f32 %v1849_v2, %v444_v22 }
 0x7f9   :  { %v449_v24 = vsel %vm448_vm3, %v1849_v2, %v445_v4 }
 0x7fa   :  { %v454_v27 = vsel %vm451_vm4, %v453_v25, %v449_v24 }
 0x7fb   :  { %v457_v29 = vmul.f32 %v454_v27, %v404_v6  ;;  %v212_v6 = vadd.f32 %v2140_v43, %v2166_v42 }
 0x858   :  { %v460_v26 = vpop.permute.xlu0 %459 }
 0x859   :  { %v462_v28 = vmul.f32 %v460_v26, %v454_v27 }
 0x85b   :  { %464 = vrot.lane.b32.xlu1 %v462_v28, %s1946_s5 }
 0x8cd   :  { %v465_v30 = vpop.permute.xlu1 %464 }
 0x8ce   :  { %v467_v31 = vadd.f32 %v465_v30, %v457_v29 }
 0x8d0   :  { %1850 = vtanh.f32 %v467_v31 }
 0x8d6   :  { %v1851_v32 = vpop.eup %1850 }
 0x8d7   :  { %470 = vrot.lane.b32.xlu2 %v1851_v32, %s1945_s26 }
 0x931   :  { %v471_v33 = vpop.permute.xlu2 %470 }
 0x932   :  { %v2189_v34 = vmul.f32 %v471_v33, %v454_v27 }
 0x934   :  { %475 = vrot.lane.b32.xlu0 %v2189_v34, %s1946_s5 }
 0x9a6   :  { %v476_v35 = vpop.permute.xlu0 %475 }
 0x9a7   :  { %1751 = vmatmul.msk.f32.vlgmr.msra.gmra.mxu2 %vm154_vm2, %v476_v35 }
 0xa2a   :  { %v496_v38 = vpop.f32.mrf.mxu2 }
 0xa2b   :  { %v499_v39 = vadd.f32 %v496_v38, %v209_v36 }
 0xa2d   :  { %1852 = vtanh.f32 %v499_v39  ;;  %v1752_v46 = vmul.f32 -1.442695, %v499_v39 }
 0xa2f   :  { %1854 = vpow2.f32 %v1752_v46 }
 0xa33   :  { %v1853_v40 = vpop.eup %1852 }
 0xa34   :  { %522 = vrot.lane.b32.xlu1 %v1853_v40, %s1945_s26 }
 0xa35   :  { %v1855_v47 = vpop.eup %1854 }
 0xa36   :  { %v503_v48 = vadd.f32 1.0, %v1855_v47 }
 0xa38   :  { %1856 = vrcp.f32 %v503_v48  ;;  %v515_v54 = vand.u32 2147483648, %v503_v48  ;;  %vm509_vm6 = vweird.f32 %v503_v48  ;;  %v513_v41 = vand.u32 2147483647, %v503_v48 }
 0xa3a   :  { %v516_v56 = vor.u32 1.1754944e-38, %v515_v54  ;;  %vm514_vm8 = vcmp.eq.f32.partialorder %v513_v41, 8.507059e+37 }
 0xa3e   :  { %v1857_v49 = vpop.eup %1856 }
 0xa3f   :  { %v505_v50 = vmul.f32 %v1857_v49, %v503_v48  ;;  %vm510_vm5 = vweird.f32 %v1857_v49 }
 0xa40   :  { %vm511_vm7 = vmor %vm509_vm6, %vm510_vm5 }
 0xa41   :  { %v506_v51 = vsub.f32 1.0, %v505_v50 }
 0xa43   :  { %v507_v52 = vmul.f32 %v1857_v49, %v506_v51 }
 0xa45   :  { %v508_v53 = vadd.f32 %v1857_v49, %v507_v52 }
 0xa47   :  { %v512_v55 = vsel %vm511_vm7, %v1857_v49, %v508_v53  ;;  %vm924_vm7 = vcmask 261124  }
 0xa48   :  { %v517_v58 = vsel %vm514_vm8, %v516_v56, %v512_v55  ;;  %vm858_vm8 = vcmask 257024  }
 0xa49   :  { %v520_v60 = vmul.f32 %v517_v58, %v467_v31  ;;  %v215_v31 = vadd.f32 %v2140_v43, %v2168_v44 }
 0xaa6   :  { %v523_v57 = vpop.permute.xlu1 %522 }
 0xaa7   :  { %v525_v59 = vmul.f32 %v523_v57, %v517_v58 }
 0xaa9   :  { %527 = vrot.lane.b32.xlu2 %v525_v59, %s1946_s5 }
 0xb03   :  { %v528_v61 = vpop.permute.xlu2 %527 }
 0xb04   :  { %v530_v62 = vadd.f32 %v528_v61, %v520_v60 }
 0xb06   :  { %1858 = vtanh.f32 %v530_v62 }
 0xb0c   :  { %v1859_v63 = vpop.eup %1858 }
 0xb0d   :  { %533 = vrot.lane.b32.xlu0 %v1859_v63, %s1945_s26 }
 0xb7f   :  { %v534_v0 = vpop.permute.xlu0 %533 }
 0xb80   :  { %v2199_v1 = vmul.f32 %v534_v0, %v517_v58 }
 0xb82   :  { %538 = vrot.lane.b32.xlu1 %v2199_v1, %s1946_s5 }
 0xbf4   :  { %v539_v5 = vpop.permute.xlu1 %538 }
 0xbf5   :  { %1753 = vmatmul.msk.f32.vlgmr.msra.gmra.mxu3 %vm154_vm2, %v539_v5 }
 0xc78   :  { %v559_v7 = vpop.f32.mrf.mxu3 }
 0xc79   :  { %v562_v9 = vadd.f32 %v559_v7, %v212_v6 }
 0xc7b   :  { %1860 = vtanh.f32 %v562_v9  ;;  %v1754_v13 = vmul.f32 -1.442695, %v562_v9 }
 0xc7d   :  { %1862 = vpow2.f32 %v1754_v13 }
 0xc81   :  { %v1861_v11 = vpop.eup %1860 }
 0xc82   :  { %585 = vrot.lane.b32.xlu2 %v1861_v11, %s1945_s26 }
 0xc83   :  { %v1863_v14 = vpop.eup %1862 }
 0xc84   :  { %v566_v15 = vadd.f32 1.0, %v1863_v14 }
 0xc86   :  { %1864 = vrcp.f32 %v566_v15  ;;  %v578_v21 = vand.u32 2147483648, %v566_v15  ;;  %vm572_vm10 = vweird.f32 %v566_v15  ;;  %v576_v42 = vand.u32 2147483647, %v566_v15 }
 0xc88   :  { %v579_v22 = vor.u32 1.1754944e-38, %v578_v21  ;;  %vm577_vm12 = vcmp.eq.f32.partialorder %v576_v42, 8.507059e+37 }
 0xc8c   :  { %v1865_v16 = vpop.eup %1864 }
 0xc8d   :  { %v568_v18 = vmul.f32 %v1865_v16, %v566_v15  ;;  %vm573_vm9 = vweird.f32 %v1865_v16 }
 0xc8e   :  { %vm574_vm11 = vmor %vm572_vm10, %vm573_vm9 }
 0xc8f   :  { %v569_v19 = vsub.f32 1.0, %v568_v18 }
 0xc91   :  { %v570_v20 = vmul.f32 %v1865_v16, %v569_v19 }
 0xc93   :  { %v571_v2 = vadd.f32 %v1865_v16, %v570_v20 }
 0xc95   :  { %v575_v3 = vsel %vm574_vm11, %v1865_v16, %v571_v2 }
 0xc96   :  { %v580_v12 = vsel %vm577_vm12, %v579_v22, %v575_v3 }
 0xc97   :  { %v583_v24 = vmul.f32 %v580_v12, %v530_v62  ;;  %v218_v62 = vadd.f32 %v2140_v43, %v2170_v45 }
 0xcdc   :  { %v586_v4 = vpop.permute.xlu2 %585 }
 0xcdd   :  { %v588_v23 = vmul.f32 %v586_v4, %v580_v12 }
 0xcdf   :  { %590 = vrot.lane.b32.xlu0 %v588_v23, %s1946_s5 }
 0xd51   :  { %v591_v25 = vpop.permute.xlu0 %590 }
 0xd52   :  { %v593_v26 = vadd.f32 %v591_v25, %v583_v24 }
 0xd54   :  { %1866 = vtanh.f32 %v593_v26 }
 0xd5a   :  { %v1867_v27 = vpop.eup %1866 }
 0xd5b   :  { %596 = vrot.lane.b32.xlu1 %v1867_v27, %s1945_s26 }
 0xdcd   :  { %v597_v28 = vpop.permute.xlu1 %596 }
 0xdce   :  { %v2209_v29 = vmul.f32 %v597_v28, %v580_v12 }
 0xdd0   :  { %601 = vrot.lane.b32.xlu2 %v2209_v29, %s1946_s5 }
 0xe2a   :  { %v602_v30 = vpop.permute.xlu2 %601 }
 0xe2b   :  { %1755 = vmatmul.msk.f32.vlgmr.msrb.gmra.mxu2 %vm154_vm2, %v602_v30 }
 0xeae   :  { %v622_v32 = vpop.f32.mrf.mxu2 }
 0xeaf   :  { %v625_v33 = vadd.f32 %v622_v32, %v215_v31 }
 0xeb1   :  { %1868 = vtanh.f32 %v625_v33  ;;  %v1756_v36 = vmul.f32 -1.442695, %v625_v33 }
 0xeb3   :  { %1870 = vpow2.f32 %v1756_v36 }
 0xeb7   :  { %v1869_v35 = vpop.eup %1868 }
 0xeb8   :  { %648 = vrot.lane.b32.xlu0 %v1869_v35, %s1945_s26 }
 0xeb9   :  { %v1871_v38 = vpop.eup %1870 }
 0xeba   :  { %v629_v39 = vadd.f32 1.0, %v1871_v38 }
 0xebc   :  { %1872 = vrcp.f32 %v629_v39  ;;  %v641_v50 = vand.u32 2147483648, %v629_v39  ;;  %vm635_vm14 = vweird.f32 %v629_v39  ;;  %v639_v44 = vand.u32 2147483647, %v629_v39 }
 0xebe   :  { %v642_v52 = vor.u32 1.1754944e-38, %v641_v50  ;;  %vm640_vm1 = vcmp.eq.f32.partialorder %v639_v44, 8.507059e+37 }
 0xec2   :  { %v1873_v40 = vpop.eup %1872 }
 0xec3   :  { %v631_v46 = vmul.f32 %v1873_v40, %v629_v39  ;;  %vm636_vm13 = vweird.f32 %v1873_v40 }
 0xec4   :  { %vm637_vm15 = vmor %vm635_vm14, %vm636_vm13 }
 0xec5   :  { %v632_v47 = vsub.f32 1.0, %v631_v46 }
 0xec7   :  { %v633_v48 = vmul.f32 %v1873_v40, %v632_v47 }
 0xec9   :  { %v634_v49 = vadd.f32 %v1873_v40, %v633_v48 }
 0xecb   :  { %v638_v51 = vsel %vm637_vm15, %v1873_v40, %v634_v49 }
 0xecc   :  { %v643_v54 = vsel %vm640_vm1, %v642_v52, %v638_v51 }
 0xecd   :  { %v646_v55 = vmul.f32 %v643_v54, %v593_v26 }
 0xf2a   :  { %v649_v53 = vpop.permute.xlu0 %648 }
 0xf2b   :  { %v651_v41 = vmul.f32 %v649_v53, %v643_v54 }
 0xf2d   :  { %653 = vrot.lane.b32.xlu1 %v651_v41, %s1946_s5 }
 0xf9f   :  { %v654_v56 = vpop.permute.xlu1 %653 }
 0xfa0   :  { %v656_v57 = vadd.f32 %v654_v56, %v646_v55 }
 0xfa2   :  { %1874 = vtanh.f32 %v656_v57 }
 0xfa8   :  { %v1875_v58 = vpop.eup %1874 }
 0xfa9   :  { %659 = vrot.lane.b32.xlu2 %v1875_v58, %s1945_s26 }
0x1003   :  { %v660_v59 = vpop.permute.xlu2 %659 }
0x1004   :  { %v2219_v60 = vmul.f32 %v660_v59, %v643_v54 }
0x1006   :  { %664 = vrot.lane.b32.xlu0 %v2219_v60, %s1946_s5 }
0x1078   :  { %v665_v61 = vpop.permute.xlu0 %664 }
0x1079   :  { %1757 = vmatmul.msk.f32.vlgmr.msrb.gmra.mxu3 %vm154_vm2, %v665_v61 }
0x10fc   :  { %v685_v63 = vpop.f32.mrf.mxu3 }
0x10fd   :  { %v688_v0 = vadd.f32 %v685_v63, %v218_v62 }
0x10ff   :  { %1876 = vtanh.f32 %v688_v0  ;;  %v1758_v6 = vmul.f32 -1.442695, %v688_v0 }
0x1101   :  { %1878 = vpow2.f32 %v1758_v6 }
0x1105   :  { %v1877_v5 = vpop.eup %1876 }
0x1106   :  { %711 = vrot.lane.b32.xlu1 %v1877_v5, %s1945_s26 }
0x1107   :  { %v1879_v7 = vpop.eup %1878 }
0x1108   :  { %v692_v9 = vadd.f32 1.0, %v1879_v7 }
0x110a   :  { %1880 = vrcp.f32 %v692_v9  ;;  %v704_v18 = vand.u32 2147483648, %v692_v9  ;;  %vm698_vm4 = vweird.f32 %v692_v9  ;;  %v702_v43 = vand.u32 2147483647, %v692_v9 }
0x110c   :  { %v705_v19 = vor.u32 1.1754944e-38, %v704_v18  ;;  %vm703_vm6 = vcmp.eq.f32.partialorder %v702_v43, 8.507059e+37 }
0x1110   :  { %v1881_v11 = vpop.eup %1880 }
0x1111   :  { %v694_v13 = vmul.f32 %v1881_v11, %v692_v9  ;;  %vm699_vm3 = vweird.f32 %v1881_v11 }
0x1112   :  { %vm700_vm5 = vmor %vm698_vm4, %vm699_vm3 }
0x1113   :  { %v695_v14 = vsub.f32 1.0, %v694_v13 }
0x1115   :  { %v696_v15 = vmul.f32 %v1881_v11, %v695_v14 }
0x1117   :  { %v697_v16 = vadd.f32 %v1881_v11, %v696_v15 }
0x1119   :  { %v701_v45 = vsel %vm700_vm5, %v1881_v11, %v697_v16 }
0x111a   :  { %v706_v2 = vsel %vm703_vm6, %v705_v19, %v701_v45 }
0x111b   :  { %v709_v42 = vmul.f32 %v706_v2, %v656_v57 }
0x1178   :  { %v712_v20 = vpop.permute.xlu1 %711 }
0x1179   :  { %v714_v21 = vmul.f32 %v712_v20, %v706_v2 }
0x117b   :  { %716 = vrot.lane.b32.xlu2 %v714_v21, %s1946_s5 }
0x11d5   :  { %v717_v3 = vpop.permute.xlu2 %716 }
0x11d6   :  { %v719_v22 = vadd.f32 %v717_v3, %v709_v42 }
0x11d8   :  { %1882 = vtanh.f32 %v719_v22 }
0x11de   :  { %v1883_v4 = vpop.eup %1882 }
0x11df   :  { %722 = vrot.lane.b32.xlu0 %v1883_v4, %s1945_s26 }
0x1251   :  { %v723_v12 = vpop.permute.xlu0 %722 }
0x1252   :  { %v2229_v23 = vmul.f32 %v723_v12, %v706_v2 }
0x1254   :  { %v742_v24 = vmul.f32 %v2229_v23, %v2176_v10  ;;  %v734_v25 = vmul.f32 %v2229_v23, %v2159_v37  ;;  %v726_v26 = vmul.f32 %v2229_v23, %v2146_v8  ;;  %v766_v27 = vmul.f32 %v2229_v23, %v2209_v29 }
0x1255   :  { %v758_v28 = vmul.f32 %v2229_v23, %v2199_v1  ;;  %v750_v30 = vmul.f32 %v2229_v23, %v2189_v34  ;;  %v782_v31 = vmul.f32 %v2229_v23, %v2229_v23  ;;  %v774_v32 = vmul.f32 %v2229_v23, %v2219_v60 }
0x1256   :  { %744 = vrot.lane.b32.xlu0 %v742_v24, %s1946_s5  ;;  %736 = vrot.lane.b32.xlu2 %v734_v25, %s1946_s5 }
0x1257   :  { %728 = vrot.lane.b32.xlu1 %v726_v26, %s1946_s5 }
0x125e   :  { %768 = vrot.lane.b32.xlu0 %v766_v27, %s1946_s5  ;;  %760 = vrot.lane.b32.xlu2 %v758_v28, %s1946_s5 }
0x125f   :  { %752 = vrot.lane.b32.xlu1 %v750_v30, %s1946_s5 }
0x1266   :  { %784 = vrot.lane.b32.xlu2 %v782_v31, %s1946_s5 }
0x1267   :  { %776 = vrot.lane.b32.xlu1 %v774_v32, %s1946_s5 }
0x12b0   :  { %v737_v33 = vpop.permute.xlu2 %736 }
0x12b1   :  { %v739_v35 = vsel %vm154_vm2, %v737_v33, 0.0 }
0x12b2   :  { %740 = vadd.xlane.f32.xlu1 %v739_v35 }
0x12b8   :  { %v761_v46 = vpop.permute.xlu2 %760 }
0x12b9   :  { %v763_v50 = vsel %vm154_vm2, %v761_v46, 0.0 }
0x12c0   :  { %v785_v51 = vpop.permute.xlu2 %784 }
0x12c1   :  { %v787_v53 = vsel %vm154_vm2, %v785_v51, 0.0 }
0x12c8   :  { %v745_v36 = vpop.permute.xlu0 %744 }
0x12c9   :  { %v729_v38 = vpop.permute.xlu1 %728  ;;  %v747_v39 = vsel %vm154_vm2, %v745_v36, 0.0 }
0x12ca   :  { %748 = vadd.xlane.f32.xlu2 %v747_v39  ;;  %v731_v40 = vsel %vm154_vm2, %v729_v38, 0.0 }
0x12cb   :  { %732 = vadd.xlane.f32.xlu0 %v731_v40 }
0x12d0   :  { %v769_v47 = vpop.permute.xlu0 %768 }
0x12d1   :  { %v753_v48 = vpop.permute.xlu1 %752  ;;  %v771_v49 = vsel %vm154_vm2, %v769_v47, 0.0 }
0x12d2   :  { %772 = vadd.xlane.f32.xlu1 %v771_v49  ;;  %v755_v44 = vsel %vm154_vm2, %v753_v48, 0.0 }
0x12d3   :  { %764 = vadd.xlane.f32.xlu0 %v763_v50  ;;  %756 = vadd.xlane.f32.xlu2 %v755_v44 }
0x12d9   :  { %v777_v52 = vpop.permute.xlu1 %776 }
0x12da   :  { %v779_v54 = vsel %vm154_vm2, %v777_v52, 0.0 }
0x12db   :  { %788 = vadd.xlane.f32.xlu0 %v787_v53  ;;  %780 = vadd.xlane.f32.xlu2 %v779_v54 }
0x1325   :  { %v741_v56 = vpop.xlane.xlu1 %740 }
0x133d   :  { %v749_v41 = vpop.xlane.xlu2 %748 }
0x133e   :  { %v733_v55 = vpop.xlane.xlu0 %732 }
0x133f   :  { %v790_v57 = vmax.f32 %v733_v55, %v741_v56 }
0x1341   :  { %v791_v58 = vmax.f32 %v790_v57, %v749_v41 }
0x1345   :  { %v773_v0 = vpop.xlane.xlu1 %772 }
0x1346   :  { %v765_v59 = vpop.xlane.xlu0 %764  ;;  %v757_v61 = vpop.xlane.xlu2 %756 }
0x1347   :  { %v792_v62 = vmax.f32 %v791_v58, %v757_v61 }
0x1349   :  { %v793_v63 = vmax.f32 %v792_v62, %v765_v59 }
0x134b   :  { %v794_v5 = vmax.f32 %v793_v63, %v773_v0 }
0x134e   :  { %v781_v6 = vpop.xlane.xlu2 %780  ;;  %v789_v9 = vpop.xlane.xlu0 %788 }
0x134f   :  { %v795_v7 = vmax.f32 %v794_v5, %v781_v6 }
0x1351   :  { %v796_v11 = vmax.f32 %v795_v7, %v789_v9 }
0x1353   :  { %v797_v13 = vsub.f32 %v733_v55, %v796_v11  ;;  %v800_v14 = vsub.f32 %v741_v56, %v796_v11  ;;  %v803_v15 = vsub.f32 %v749_v41, %v796_v11  ;;  %v806_v16 = vsub.f32 %v757_v61, %v796_v11 }
0x1354   :  { %v809_v19 = vsub.f32 %v765_v59, %v796_v11  ;;  %v812_v2 = vsub.f32 %v773_v0, %v796_v11  ;;  %v815_v42 = vsub.f32 %v781_v6, %v796_v11  ;;  %v818_v22 = vsub.f32 %v789_v9, %v796_v11 }
0x1355   :  { %v798_v18 = vmul.f32 1.442695, %v797_v13  ;;  %v801_v43 = vmul.f32 1.442695, %v800_v14  ;;  %v804_v45 = vmul.f32 1.442695, %v803_v15 }
0x1356   :  { %v807_v20 = vmul.f32 1.442695, %v806_v16  ;;  %v810_v21 = vmul.f32 1.442695, %v809_v19  ;;  %v813_v3 = vmul.f32 1.442695, %v812_v2 }
0x1357   :  { %1884 = vpow2.f32 %v798_v18  ;;  %v816_v24 = vmul.f32 1.442695, %v815_v42  ;;  %v819_v27 = vmul.f32 1.442695, %v818_v22 }
0x1358   :  { %1886 = vpow2.f32 %v801_v43 }
0x1359   :  { %1888 = vpow2.f32 %v804_v45 }
0x135a   :  { %1890 = vpow2.f32 %v807_v20 }
0x135b   :  { %1892 = vpow2.f32 %v810_v21 }
0x135c   :  { %1894 = vpow2.f32 %v813_v3 }
0x135d   :  { %v1885_v4 = vpop.eup %1884  ;;  %1896 = vpow2.f32 %v816_v24 }
0x135e   :  { %v1887_v12 = vpop.eup %1886  ;;  %1898 = vpow2.f32 %v819_v27 }
0x135f   :  { %v821_v25 = vadd.f32 %v1887_v12, %v1885_v4  ;;  %v1889_v26 = vpop.eup %1888 }
0x1360   :  { %v1891_v30 = vpop.eup %1890 }
0x1361   :  { %v822_v28 = vadd.f32 %v1889_v26, %v821_v25  ;;  %v1893_v32 = vpop.eup %1892 }
0x1362   :  { %v1895_v35 = vpop.eup %1894 }
0x1363   :  { %v823_v31 = vadd.f32 %v1891_v30, %v822_v28  ;;  %v1897_v38 = vpop.eup %1896 }
0x1364   :  { %v1899_v40 = vpop.eup %1898 }
0x1365   :  { %v824_v33 = vadd.f32 %v1893_v32, %v823_v31 }
0x1367   :  { %v825_v36 = vadd.f32 %v1895_v35, %v824_v33 }
0x1369   :  { %v826_v39 = vadd.f32 %v1897_v38, %v825_v36 }
0x136b   :  { %v827_v46 = vadd.f32 %v1899_v40, %v826_v39 }
0x136d   :  { %1900 = vrcp.f32 %v827_v46 }
0x1373   :  { %v1901_v47 = vpop.eup %1900 }
0x1374   :  { %v829_v48 = vmul.f32 %v1901_v47, %v1885_v4  ;;  %v831_v49 = vmul.f32 %v1901_v47, %v1887_v12  ;;  %v834_v50 = vmul.f32 %v1901_v47, %v1889_v26  ;;  %v837_v52 = vmul.f32 %v1901_v47, %v1891_v30 }
0x1375   :  { %v840_v41 = vmul.f32 %v1901_v47, %v1893_v32  ;;  %v843_v57 = vmul.f32 %v1901_v47, %v1895_v35  ;;  %v846_v58 = vmul.f32 %v1901_v47, %v1897_v38  ;;  %v849_v0 = vmul.f32 %v1901_v47, %v1899_v40 }
0x1376   :  { %v830_v44 = vmul.f32 %v829_v48, %v2146_v8  ;;  %v832_v51 = vmul.f32 %v831_v49, %v2159_v37  ;;  %v835_v54 = vmul.f32 %v834_v50, %v2176_v10  ;;  %v838_v56 = vmul.f32 %v837_v52, %v2189_v34 }
0x1377   :  { %v841_v61 = vmul.f32 %v840_v41, %v2199_v1  ;;  %v844_v63 = vmul.f32 %v843_v57, %v2209_v29  ;;  %v847_v37 = vmul.f32 %v846_v58, %v2219_v60  ;;  %v850_v6 = vmul.f32 %v849_v0, %v2229_v23 }
0x1378   :  { %v833_v53 = vadd.f32 %v832_v51, %v830_v44 }
0x137a   :  { %v836_v55 = vadd.f32 %v835_v54, %v833_v53 }
0x137c   :  { %v839_v59 = vadd.f32 %v838_v56, %v836_v55 }
0x137e   :  { %v842_v62 = vadd.f32 %v841_v61, %v839_v59 }
0x1380   :  { %v845_v8 = vadd.f32 %v844_v63, %v842_v62 }
0x1382   :  { %v848_v5 = vadd.f32 %v847_v37, %v845_v8 }
0x1384   :  { %v851_v10 = vadd.f32 %v850_v6, %v848_v5 }
0x1386   :  { %855 = vrot.lane.b32.xlu1 %v851_v10, %s1946_s5 }
0x13f8   :  { %v856_v34 = vpop.permute.xlu1 %855 }
0x13f9   :  { %v925_v7 = vsel %vm924_vm7, %v856_v34, 0.0  ;;  %v859_v1 = vsel %vm858_vm8, %v856_v34, 0.0 }
0x13fa   :  { %926 = vadd.xlane.f32.xlu2 %v925_v7  ;;  %860 = vadd.xlane.f32.xlu0 %v859_v1 }
0x146d   :  { %v927_v29 = vpop.xlane.xlu2 %926  ;;  %v861_v9 = vpop.xlane.xlu0 %860 }
0x146e   :  { %v929_v11 = vrot.slane %v927_v29, 4  ;;  %v862_v60 = vsel %vm93_vm0, %v861_v9, 0.0 }
0x146f   :  { %v863_v13 = vrot.slane %v862_v60, 4 }
0x1470   :  { %v931_v23 = vsel %vm93_vm0, %v929_v11, 0.0 }
0x1471   :  { %v932_v14 = vrot.slane %v931_v23, 4  ;;  %v864_v15 = vadd.f32 %v863_v13, %v862_v60 }
0x1473   :  { %v933_v16 = vadd.f32 %v932_v14, %v931_v23  ;;  %v865_v18 = vrot.slane %v864_v15, 2 }
0x1475   :  { %v934_v43 = vrot.slane %v933_v16, 2  ;;  %v866_v45 = vadd.f32 %v865_v18, %v864_v15 }
0x1477   :  { %v935_v19 = vadd.f32 %v934_v43, %v933_v16  ;;  %v867_v20 = vrot.slane %v866_v45, 1 }
0x1479   :  { %v936_v2 = vrot.slane %v935_v19, 1  ;;  %v868_v21 = vadd.f32 %v867_v20, %v866_v45 }
0x147b   :  { %v937_v42 = vadd.f32 %v936_v2, %v935_v19  ;;  %v869_v3 = vmul.f32 0.0078125, %v868_v21 }
0x147d   :  { %v2276_v22 = vsub.f32 %v851_v10, %v869_v3  ;;  %v938_v4 = vmul.f32 0.0078125, %v937_v42 }
0x147f   :  { %v871_v12 = vmul.f32 %v2276_v22, %v2276_v22  ;;  %v2280_v24 = vsub.f32 %v851_v10, %v938_v4 }
0x1481   :  { %873 = vrot.lane.b32.xlu0 %v871_v12, %s1946_s5  ;;  %v940_v25 = vmul.f32 %v2280_v24, %v2280_v24 }
0x1483   :  { %942 = vrot.lane.b32.xlu2 %v940_v25, %s1946_s5 }
0x14dd   :  { %v943_v26 = vpop.permute.xlu2 %942 }
0x14de   :  { %v945_v27 = vsel %vm924_vm7, %v943_v26, 0.0 }
0x14df   :  { %946 = vadd.xlane.f32.xlu1 %v945_v27 }
0x14f3   :  { %v874_v28 = vpop.permute.xlu0 %873 }
0x14f4   :  { %v876_v30 = vsel %vm858_vm8, %v874_v28, 0.0 }
0x14f5   :  { %877 = vadd.xlane.f32.xlu0 %v876_v30 }
0x1552   :  { %v947_v31 = vpop.xlane.xlu1 %946 }
0x1553   :  { %v949_v32 = vrot.slane %v947_v31, 4 }
0x1555   :  { %v951_v33 = vsel %vm93_vm0, %v949_v32, 0.0 }
0x1556   :  { %v952_v35 = vrot.slane %v951_v33, 4 }
0x1558   :  { %v953_v36 = vadd.f32 %v952_v35, %v951_v33  ;;  %v1036_v35 = vlaneseq }
0x155a   :  { %v954_v38 = vrot.slane %v953_v36, 2 }
0x155c   :  { %v955_v39 = vadd.f32 %v954_v38, %v953_v36  ;;  %v1008_v36 = vld [vmem:[%s2545_s8 + $0x18] sm:$0xff]  ;;  %v1007_v38 = vld [vmem:[%s2545_s8 + $0x10] sm:$0xff] }
0x155d   :  { %1028 = vmatpush.msra.mxu2 %v1008_v36 }
0x155e   :  { %v956_v40 = vrot.slane %v955_v39, 1 }
0x155f   :  { %1029 = vmatpush.msra.mxu2 %v1007_v38 }
0x1560   :  { %v957_v46 = vadd.f32 %v956_v40, %v955_v39  ;;  %v2300_v39 = vand.u32 127, %v1036_v35 }
0x1562   :  { %v958_v47 = vmul.f32 0.007874016, %v957_v46  ;;  %vm1042_vm6 = vcmp.ge.s32.totalorder %v2300_v39, 8  ;;  %vm1043_vm7 = vcmp.lt.s32.totalorder %v2300_v39, 16  ;;  %v852_v46 = vld [vmem:[%s2546_s6] sm:$0xf] }
0x1563   :  { %vm1044_vm8 = vmand %vm1042_vm6, %vm1043_vm7  ;;  %vm1721_vm6 = vcmask 5120  }
0x1564   :  { %1902 = vrsqrt.f32 %v958_v47  ;;  %vm966_vm9 = vcmp.eq.f32.partialorder %v958_v47, inf  ;;  %v969_v0 = vand.u32 2147483648, %v958_v47  ;;  %vm968_vm10 = vcmp.eq.f32.partialorder %v958_v47, 0.0 }
0x1565   :  { %v1045_v40 = vsel %vm1044_vm8, 1.0, %v1944_v17 }
0x1566   :  { %1138 = vrot.lane.b32.xlu1 %v1045_v40, %s1945_s26 }
0x1568   :  { %v878_v48 = vpop.xlane.xlu0 %877 }
0x1569   :  { %v879_v49 = vsel %vm93_vm0, %v878_v48, 0.0 }
0x156a   :  { %v1903_v50 = vpop.eup %1902  ;;  %v880_v44 = vrot.slane %v879_v49, 4 }
0x156b   :  { %v960_v51 = vmul.f32 %v1903_v50, %v958_v47 }
0x156c   :  { %v881_v52 = vadd.f32 %v880_v44, %v879_v49 }
0x156d   :  { %v961_v53 = vmul.f32 %v1903_v50, %v960_v51 }
0x156e   :  { %v882_v54 = vrot.slane %v881_v52, 2 }
0x156f   :  { %v962_v41 = vmul.f32 0.5, %v961_v53 }
0x1570   :  { %v883_v55 = vadd.f32 %v882_v54, %v881_v52 }
0x1571   :  { %v963_v56 = vsub.f32 1.5, %v962_v41 }
0x1572   :  { %v884_v57 = vrot.slane %v883_v55, 1 }
0x1573   :  { %v964_v58 = vmul.f32 %v1903_v50, %v963_v56 }
0x1574   :  { %v885_v59 = vadd.f32 %v884_v57, %v883_v55 }
0x1575   :  { %v965_v62 = vmul.f32 %v964_v58, %v958_v47 }
0x1576   :  { %v886_v61 = vmul.f32 0.007874016, %v885_v59 }
0x1577   :  { %v967_v63 = vsel %vm966_vm9, %v958_v47, %v965_v62  ;;  %v853_v47 = vld [vmem:[%s2547_s7] sm:$0xf]  ;;  %vm1339_vm9 = vcmask 1040384  }
0x1578   :  { %1904 = vrsqrt.f32 %v886_v61  ;;  %v970_v37 = vsel %vm968_vm10, %v969_v0, %v967_v63  ;;  %vm894_vm0 = vcmp.eq.f32.partialorder %v886_v61, inf  ;;  %v897_v9 = vand.u32 2147483648, %v886_v61 }
0x1579   :  { %v971_v10 = vadd.f32 1e-09, %v970_v37  ;;  %vm896_vm11 = vcmp.eq.f32.partialorder %v886_v61, 0.0  ;;  %vm1341_vm10 = vcmask 1041408  }
0x157b   :  { %1906 = vrcp.f32 %v971_v10  ;;  %vm977_vm14 = vweird.f32 %v971_v10  ;;  %v983_v42 = vand.u32 2147483648, %v971_v10  ;;  %v981_v4 = vand.u32 2147483647, %v971_v10 }
0x157d   :  { %v984_v28 = vor.u32 1.1754944e-38, %v983_v42  ;;  %vm982_vm5 = vcmp.eq.f32.partialorder %v981_v4, 8.507059e+37 }
0x157e   :  { %v1905_v8 = vpop.eup %1904 }
0x157f   :  { %v888_v5 = vmul.f32 %v1905_v8, %v886_v61 }
0x1581   :  { %v889_v6 = vmul.f32 %v1905_v8, %v888_v5  ;;  %v1907_v11 = vpop.eup %1906 }
0x1582   :  { %v973_v14 = vmul.f32 %v1907_v11, %v971_v10  ;;  %vm978_vm12 = vweird.f32 %v1907_v11  ;;  %v1800_v10 = vld [vmem:[%s2544_s9] ss:$0 sm:$0xff] }
0x1583   :  { %v890_v34 = vmul.f32 0.5, %v889_v6  ;;  %vm979_vm1 = vmor %vm977_vm14, %vm978_vm12  ;;  %vm1084_vm12 = vcmask 18432   ;;  %vm1047_vm14 = vcmp.lt.s32.totalorder %v2300_v39, 24 }
0x1584   :  { %v974_v15 = vsub.f32 1.0, %v973_v14 }
0x1585   :  { %v891_v7 = vsub.f32 1.5, %v890_v34 }
0x1586   :  { %v975_v43 = vmul.f32 %v1907_v11, %v974_v15 }
0x1587   :  { %v892_v1 = vmul.f32 %v1905_v8, %v891_v7 }
0x1588   :  { %v976_v21 = vadd.f32 %v1907_v11, %v975_v43 }
0x1589   :  { %v893_v29 = vmul.f32 %v892_v1, %v886_v61 }
0x158a   :  { %v980_v26 = vsel %vm979_vm1, %v1907_v11, %v976_v21 }
0x158b   :  { %v895_v60 = vsel %vm894_vm0, %v886_v61, %v893_v29  ;;  %v985_v31 = vsel %vm982_vm5, %v984_v28, %v980_v26  ;;  %vm1003_vm0 = vcmask 1042432  }
0x158c   :  { %v898_v13 = vsel %vm896_vm11, %v897_v9, %v895_v60  ;;  %v986_v32 = vmul.f32 %v985_v31, %v2280_v24  ;;  %v1005_v24 = vld [vmem:[%s2545_s8] sm:$0xff]  ;;  %vm1039_vm11 = vcmp.lt.s32.totalorder %v2300_v39, 8 }
0x158d   :  { %v899_v23 = vadd.f32 1e-09, %v898_v13  ;;  %v1041_v1 = vsel %vm1039_vm11, 1.0, %v1944_v17 }
0x158e   :  { %v988_v33 = vrot.slane %v986_v32, 4 }
0x158f   :  { %1908 = vrcp.f32 %v899_v23  ;;  %v911_v19 = vand.u32 2147483648, %v899_v23  ;;  %v909_v2 = vand.u32 2147483647, %v899_v23  ;;  %vm905_vm15 = vweird.f32 %v899_v23 }
0x1591   :  { %v912_v12 = vor.u32 1.1754944e-38, %v911_v19  ;;  %vm910_vm4 = vcmp.eq.f32.partialorder %v909_v2, 8.507059e+37 }
0x1595   :  { %v1909_v16 = vpop.eup %1908 }
0x1596   :  { %v901_v18 = vmul.f32 %v1909_v16, %v899_v23  ;;  %vm906_vm13 = vweird.f32 %v1909_v16 }
0x1597   :  { %vm907_vm3 = vmor %vm905_vm15, %vm906_vm13  ;;  %vm1046_vm13 = vcmp.ge.s32.totalorder %v2300_v39, 16  ;;  %vm1145_vm15 = vcmask 23552  }
0x1598   :  { %v902_v45 = vsub.f32 1.0, %v901_v18  ;;  %vm1048_vm1 = vmand %vm1046_vm13, %vm1047_vm14 }
0x1599   :  { %v1049_v31 = vsel %vm1048_vm1, 1.0, %v1944_v17 }
0x159a   :  { %v903_v20 = vmul.f32 %v1909_v16, %v902_v45 }
0x159c   :  { %v904_v3 = vadd.f32 %v1909_v16, %v903_v20 }
0x159e   :  { %v908_v25 = vsel %vm907_vm3, %v1909_v16, %v904_v3  ;;  %vm1050_vm3 = vcmp.ge.s32.totalorder %v2300_v39, 24 }
0x159f   :  { %v913_v27 = vsel %vm910_vm4, %v912_v12, %v908_v25  ;;  %vm1051_vm4 = vcmp.lt.s32.totalorder %v2300_v39, 32 }
0x15a0   :  { %v914_v30 = vmul.f32 %v913_v27, %v2276_v22  ;;  %v1006_v22 = vld [vmem:[%s2545_s8 + $0x8] sm:$0xff]  ;;  %s1947_s8 = smov 96   ;;  %vm1052_vm5 = vmand %vm1050_vm3, %vm1051_vm4 }
0x15a1   :  { %1030 = vmatpush.msra.mxu2 %v1006_v22 }
0x15a2   :  { %916 = vrot.lane.b32.xlu2 %v914_v30, %s1946_s5 }
0x15a3   :  { %1031 = vmatpush.msra.mxu2 %v1005_v24 }
0x15aa   :  { %989 = vrot.lane.b32.xlu2 %v988_v33, %s1946_s5  ;;  %v1053_v33 = vsel %vm1052_vm5, 1.0, %v1944_v17 }
0x15d8   :  { %v1139_v2 = vpop.permute.xlu1 %1138 }
0x15fc   :  { %v917_v48 = vpop.permute.xlu2 %916 }
0x15fd   :  { %v919_v49 = vmul.f32 %v917_v48, %v852_v46 }
0x15ff   :  { %v920_v50 = vadd.f32 %v919_v49, %v853_v47 }
0x1601   :  { %v921_v44 = vmul.f32 0.1, %v920_v50 }
0x1603   :  { %v922_v52 = vperm.slane %v921_v44, 0 }
0x1604   :  { %v990_v51 = vpop.permute.xlu2 %989 }
0x1605   :  { %v992_v53 = vmul.f32 %v990_v51, %v852_v46  ;;  %v923_v41 = vadd.f32 %v922_v52, %v920_v50 }
0x1607   :  { %v993_v54 = vadd.f32 %v992_v53, %v853_v47  ;;  %v998_v57 = vrot.slane %v923_v41, 1  ;;  %v1605_v59 = vrot.slane %v923_v41, 2 }
0x1609   :  { %v994_v55 = vmul.f32 0.1, %v993_v54 }
0x160b   :  { %v995_v56 = vperm.slane %v994_v55, 0 }
0x160d   :  { %v996_v58 = vadd.f32 %v995_v56, %v993_v54 }
0x160f   :  { %v1001_v61 = vrot.slane %v996_v58, 6  ;;  %v1340_v62 = vsel %vm1339_vm9, %v998_v57, %v996_v58  ;;  %v1603_v63 = vrot.slane %v996_v58, 2  ;;  %v1607_v0 = vrot.slane %v996_v58, 1 }
0x1610   :  { %v2318_v8 = vsel %vm1341_vm10, %v1340_v62, %v923_v41 }
0x1611   :  { %v1004_v37 = vsel %vm1003_vm0, %v998_v57, %v1001_v61  ;;  %v1609_v5 = vsel %vm1339_vm9, %v1603_v63, %v1605_v59 }
0x1612   :  { %1759 = vmatmul.msk.f32.vlgmr.msra.gmra.mxu2 %vm154_vm2, %v1004_v37  ;;  %v2322_v6 = vsel %vm1341_vm10, %v1609_v5, %v1607_v0 }
0x1695   :  { %v1033_v34 = vpop.f32.mrf.mxu2 }
0x1696   :  { %v2327_v7 = vadd.f32 %v1800_v10, %v1033_v34 }
0x1698   :  { %1056 = vrot.lane.b32.xlu2 %v2327_v7, %s1947_s8  ;;  %v2336_v9 = vmul.f32 %v1041_v1, %v2327_v7  ;;  %v2339_v11 = vmul.f32 %v1045_v40, %v2327_v7  ;;  %v2349_v21 = vmul.f32 %v1139_v2, %v2327_v7  ;;  %v1199_v32 = vmul.f32 %v1049_v31, %v2327_v7 }
0x1699   :  { %v2368_v35 = vmul.f32 %v1053_v33, %v2327_v7  ;;  %v1345_v17 = vrot.slane %v2327_v7, 3 }
0x169a   :  { %v1344_v55 = vrot.slane %v2336_v9, 3  ;;  %v1475_v56 = vrot.slane %v1199_v32, 3  ;;  %v1384_v10 = vrot.slane %v2339_v11, 3 }
0x16f2   :  { %v1057_v29 = vpop.permute.xlu2 %1056 }
0x16f3   :  { %1760 = vmatpush.xpose.msk.msra.mxu3 %vm154_vm2, %v1057_v29  ;;  %1762 = vmatpush.xpose.msk.msrb.mxu2 %vm154_vm2, %v1057_v29 }
0x16f6   :  { %1761 = vmatmul.msk.f32.vlgmr.msra.gmra.mxu3 %vm154_vm2, %v2336_v9  ;;  %1763 = vmatmul.msk.f32.vlgmr.msrb.gmra.mxu2 %vm154_vm2, %v2339_v11 }
0x1779   :  { %v1080_v60 = vpop.f32.mrf.mxu3  ;;  %v1122_v13 = vpop.f32.mrf.mxu2 }
0x177a   :  { %v1083_v23 = vmul.f32 0.35355338, %v1080_v60  ;;  %v1125_v14 = vmul.f32 0.35355338, %v1122_v13 }
0x177c   :  { %v1126_v15 = vsel %vm1084_vm12, %v1125_v14, -inf  ;;  %v1085_v16 = vsel %vm1084_vm12, %v1083_v23, -inf }
0x177d   :  { %1127 = vmax.xlane.f32.xlu2 %v1126_v15  ;;  %1086 = vmax.xlane.f32.xlu1 %v1085_v16 }
0x17f0   :  { %v1128_v18 = vpop.xlane.xlu2 %1127  ;;  %v1087_v42 = vpop.xlane.xlu1 %1086 }
0x17f1   :  { %v1129_v43 = vsub.f32 %v1125_v14, %v1128_v18  ;;  %v1088_v3 = vsub.f32 %v1083_v23, %v1087_v42 }
0x17f3   :  { %v1130_v45 = vmul.f32 1.442695, %v1129_v43  ;;  %v1089_v4 = vmul.f32 1.442695, %v1088_v3 }
0x17f5   :  { %1910 = vpow2.f32 %v1130_v45 }
0x17f6   :  { %1912 = vpow2.f32 %v1089_v4 }
0x17fb   :  { %v1911_v19 = vpop.eup %1910 }
0x17fc   :  { %v1132_v20 = vsel %vm1084_vm12, %v1911_v19, 0.0  ;;  %v1913_v12 = vpop.eup %1912 }
0x17fd   :  { %1133 = vadd.xlane.f32.xlu0 %v1132_v20  ;;  %v1091_v25 = vsel %vm1084_vm12, %v1913_v12, 0.0 }
0x1811   :  { %1143 = vrot.lane.b32.xlu0 %v2349_v21, %s1945_s26 }
0x1819   :  { %1097 = vrot.lane.b32.xlu0 %v1041_v1, %s1945_s26 }
0x1843   :  { %1092 = vadd.xlane.f32.xlu0 %v1091_v25  ;;  %v1419_v25 = vrot.slane %v2349_v21, 3  ;;  %v1539_v21 = vrot.slane %v2368_v35, 3 }
0x1870   :  { %v1134_v26 = vpop.xlane.xlu0 %1133 }
0x1871   :  { %1914 = vrcp.f32 %v1134_v26 }
0x1877   :  { %v1915_v27 = vpop.eup %1914 }
0x1878   :  { %v1136_v28 = vmul.f32 %v1915_v27, %v1911_v19 }
0x1883   :  { %v1144_v30 = vpop.permute.xlu0 %1143 }
0x1884   :  { %1764 = vmatpush.msk.msrb.mxu3 %vm1003_vm0, %v1144_v30 }
0x1885   :  { %1765 = vmatmul.msk.f32.vlgmr.msrb.gmra.mxu3 %vm1145_vm15, %v1136_v28 }
0x1886   :  { %1768 = vmatpush.xpose.msk.msra.mxu3 %vm154_vm2, %v1057_v29 }
0x188a   :  { %1772 = vmatpush.xpose.msk.msrb.mxu3 %vm154_vm2, %v1057_v29 }
0x188b   :  { %v1098_v39 = vpop.permute.xlu0 %1097 }
0x188c   :  { %v1100_v40 = vmul.f32 %v1098_v39, %v2327_v7 }
0x188d   :  { %1769 = vmatmul.msk.f32.vlgmr.msra.gmra.mxu3 %vm154_vm2, %v1199_v32 }
0x188e   :  { %v1447_v62 = vrot.slane %v1100_v40, 3 }
0x1895   :  { %1773 = vmatmul.msk.f32.vlgmr.msrb.gmra.mxu3 %vm154_vm2, %v2368_v35 }
0x18b6   :  { %v1093_v49 = vpop.xlane.xlu0 %1092 }
0x1908   :  { %v2372_v36 = vpop.f32.mrf.mxu3 }
0x1910   :  { %v1220_v38 = vpop.f32.mrf.mxu3 }
0x1911   :  { %v1223_v22 = vmul.f32 0.35355338, %v1220_v38 }
0x1913   :  { %v1224_v24 = vsel %vm1084_vm12, %v1223_v22, -inf }
0x1914   :  { %1225 = vmax.xlane.f32.xlu2 %v1224_v24 }
0x1918   :  { %v1290_v58 = vpop.f32.mrf.mxu3 }
0x1919   :  { %v1293_v59 = vmul.f32 0.35355338, %v1290_v58 }
0x191b   :  { %v1294_v61 = vsel %vm1084_vm12, %v1293_v59, -inf }
0x192c   :  { %1236 = vrot.lane.b32.xlu2 %v1049_v31, %s1945_s26 }
0x1934   :  { %1172 = vrot.lane.b32.xlu2 %v1100_v40, %s1945_s26 }
0x193c   :  { %1346 = vrot.lane.b32.xlu2 %v1345_v17, %s1947_s8 }
0x1987   :  { %v1226_v46 = vpop.xlane.xlu2 %1225 }
0x1988   :  { %v1227_v47 = vsub.f32 %v1223_v22, %v1226_v46 }
0x198a   :  { %v1228_v48 = vmul.f32 1.442695, %v1227_v47 }
0x198c   :  { %1916 = vpow2.f32 %v1228_v48 }
0x198d   :  { %1918 = vrcp.f32 %v1093_v49 }
0x198f   :  { %v1237_v50 = vpop.permute.xlu2 %1236 }
0x1990   :  { %v2392_v57 = vmul.f32 %v1237_v50, %v2327_v7 }
0x1992   :  { %v1917_v44 = vpop.eup %1916 }
0x1993   :  { %v1230_v51 = vsel %vm1084_vm12, %v1917_v44, 0.0  ;;  %v1919_v52 = vpop.eup %1918 }
0x1994   :  { %1231 = vadd.xlane.f32.xlu1 %v1230_v51  ;;  %v1095_v53 = vmul.f32 %v1919_v52, %v1913_v12 }
0x1997   :  { %v1173_v54 = vpop.permute.xlu2 %1172 }
0x1998   :  { %1766 = vmatpush.msk.msra.mxu2 %vm1003_vm0, %v1173_v54 }
0x1999   :  { %1767 = vmatmul.msk.f32.vlgmr.msra.gmra.mxu2 %vm1145_vm15, %v1095_v53 }
0x199f   :  { %v2383_v41 = vpop.permute.xlu2 %1346 }
0x19a0   :  { %1776 = vmatpush.xpose.msk.msra.mxu1 %vm154_vm2, %v2383_v41 }
0x19a3   :  { %1777 = vmatmul.msk.f32.vlgmr.msra.gmra.mxu1 %vm154_vm2, %v1344_v55 }
0x19a4   :  { %1784 = vmatpush.xpose.msk.msrb.mxu1 %vm154_vm2, %v2383_v41 }
0x19ab   :  { %1785 = vmatmul.msk.f32.vlgmr.msrb.gmra.mxu1 %vm154_vm2, %v1475_v56 }
0x19ad   :  { %1241 = vrot.lane.b32.xlu1 %v2392_v57, %s1945_s26 }
0x19d7   :  { %1295 = vmax.xlane.f32.xlu1 %v1294_v61 }
0x19f0   :  { %1306 = vrot.lane.b32.xlu1 %v1053_v33, %s1945_s26 }
0x19f8   :  { %1448 = vrot.lane.b32.xlu1 %v1447_v62, %s1945_s26 }
0x1a07   :  { %v1232_v63 = vpop.xlane.xlu1 %1231 }
0x1a08   :  { %1920 = vrcp.f32 %v1232_v63 }
0x1a0e   :  { %v1921_v0 = vpop.eup %1920 }
0x1a0f   :  { %v1234_v37 = vmul.f32 %v1921_v0, %v1917_v44 }
0x1a1c   :  { %v2408_v60 = vpop.f32.mrf.mxu2 }
0x1a1d   :  { %v1197_v61 = vadd.f32 %v2408_v60, %v2372_v36 }
0x1a1f   :  { %v1242_v5 = vpop.permute.xlu1 %1241 }
0x1a20   :  { %1770 = vmatpush.msk.msrb.mxu2 %vm1003_vm0, %v1242_v5  ;;  %v1369_v23 = vpop.f32.mrf.mxu1 }
0x1a21   :  { %1771 = vmatmul.msk.f32.vlgmr.msrb.gmra.mxu2 %vm1145_vm15, %v1234_v37  ;;  %v1372_v26 = vmul.f32 0.35355338, %v1369_v23 }
0x1a22   :  { %1778 = vmatpush.xpose.msk.msra.mxu2 %vm154_vm2, %v2383_v41 }
0x1a23   :  { %v1373_v27 = vsel %vm1084_vm12, %v1372_v26, -inf }
0x1a28   :  { %v1495_v11 = vpop.f32.mrf.mxu1 }
0x1a29   :  { %1779 = vmatmul.msk.f32.vlgmr.msra.gmra.mxu2 %vm154_vm2, %v1384_v10  ;;  %v1498_v45 = vmul.f32 0.35355338, %v1495_v11  ;;  %v1663_v11 = vld [vmem:[%s2550_s12 + $0x78] sm:$0xff] }
0x1a4a   :  { %v1296_v34 = vpop.xlane.xlu1 %1295 }
0x1a4b   :  { %v1297_v16 = vsub.f32 %v1293_v59, %v1296_v34 }
0x1a4d   :  { %v1298_v43 = vmul.f32 1.442695, %v1297_v16  ;;  %v1618_v16 = vld [vmem:[%s2549_s10 + $0x10] sm:$0xff] }
0x1a4f   :  { %1922 = vpow2.f32 %v1298_v43  ;;  %v1662_v43 = vld [vmem:[%s2550_s12 + $0x70] sm:$0xff] }
0x1a55   :  { %v1923_v19 = vpop.eup %1922 }
0x1a56   :  { %v1300_v20 = vsel %vm1084_vm12, %v1923_v19, 0.0 }
0x1a62   :  { %v1307_v1 = vpop.permute.xlu1 %1306 }
0x1a63   :  { %v1309_v29 = vmul.f32 %v1307_v1, %v2327_v7  ;;  %v1499_v7 = vsel %vm1084_vm12, %v1498_v45, -inf }
0x1a65   :  { %v1574_v9 = vrot.slane %v1309_v29, 3 }
0x1a67   :  { %1575 = vrot.lane.b32.xlu1 %v1574_v9, %s1945_s26  ;;  %v1510_v9 = vrot.slane %v2392_v57, 3  ;;  %v1619_v57 = vld [vmem:[%s2549_s10 + $0x18] sm:$0xff] }
0x1a68   :  { %1639 = vmatpush.msra.mxu1 %v1619_v57 }
0x1a6a   :  { %v1449_v46 = vpop.permute.xlu1 %1448  ;;  %1640 = vmatpush.msra.mxu1 %v1618_v16 }
0x1aa4   :  { %v2410_v13 = vpop.f32.mrf.mxu2 }
0x1aa5   :  { %v1268_v62 = vadd.f32 %v2410_v13, %v1197_v61 }
0x1aac   :  { %v1404_v14 = vpop.f32.mrf.mxu2 }
0x1aad   :  { %v1407_v15 = vmul.f32 0.35355338, %v1404_v14 }
0x1aaf   :  { %v1408_v18 = vsel %vm1084_vm12, %v1407_v15, -inf }
0x1ab0   :  { %1409 = vmax.xlane.f32.xlu2 %v1408_v18  ;;  %v1617_v18 = vld [vmem:[%s2549_s10 + $0x8] sm:$0xff] }
0x1ab1   :  { %1641 = vmatpush.msra.mxu1 %v1617_v18 }
0x1ab8   :  { %1500 = vmax.xlane.f32.xlu2 %v1499_v7  ;;  %v1661_v7 = vld [vmem:[%s2550_s12 + $0x68] sm:$0xff] }
0x1ac0   :  { %1301 = vadd.xlane.f32.xlu2 %v1300_v20  ;;  %v1659_v20 = vld [vmem:[%s2550_s12 + $0x58] sm:$0xff] }
0x1ad9   :  { %v1576_v35 = vpop.permute.xlu1 %1575 }
0x1b23   :  { %v1410_v2 = vpop.xlane.xlu2 %1409 }
0x1b24   :  { %v1411_v42 = vsub.f32 %v1407_v15, %v1410_v2  ;;  %v1658_v2 = vld [vmem:[%s2550_s12 + $0x50] sm:$0xff] }
0x1b26   :  { %v1412_v3 = vmul.f32 1.442695, %v1411_v42  ;;  %v1657_v42 = vld [vmem:[%s2550_s12 + $0x48] sm:$0xff] }
0x1b28   :  { %1924 = vpow2.f32 %v1412_v3  ;;  %v1656_v3 = vld [vmem:[%s2550_s12 + $0x40] sm:$0xff] }
0x1b2b   :  { %v1501_v33 = vpop.xlane.xlu2 %1500 }
0x1b2c   :  { %v1502_v44 = vsub.f32 %v1498_v45, %v1501_v33  ;;  %v1616_v45 = vld [vmem:[%s2549_s10] sm:$0xff] }
0x1b2d   :  { %1642 = vmatpush.msra.mxu1 %v1616_v45 }
0x1b2e   :  { %v1925_v4 = vpop.eup %1924  ;;  %v1503_v51 = vmul.f32 1.442695, %v1502_v44  ;;  %v1690_v44 = vld [vmem:[%s2552_s14] sm:$0xff] }
0x1b2f   :  { %v1414_v12 = vsel %vm1084_vm12, %v1925_v4, 0.0 }
0x1b30   :  { %1415 = vadd.xlane.f32.xlu0 %v1414_v12 }
0x1b33   :  { %v1302_v39 = vpop.xlane.xlu2 %1301 }
0x1b44   :  { %1420 = vrot.lane.b32.xlu0 %v1419_v25, %s1945_s26  ;;  %v1654_v25 = vld [vmem:[%s2550_s12 + $0x30] sm:$0xff] }
0x1b6e   :  { %1374 = vmax.xlane.f32.xlu0 %v1373_v27  ;;  %v1652_v27 = vld [vmem:[%s2550_s12 + $0x20] sm:$0xff] }
0x1b82   :  { %1311 = vrot.lane.b32.xlu0 %v1309_v29, %s1945_s26 }
0x1ba3   :  { %v1416_v28 = vpop.xlane.xlu0 %1415 }
0x1ba4   :  { %1926 = vrcp.f32 %v1416_v28 }
0x1baa   :  { %v1927_v30 = vpop.eup %1926 }
0x1bab   :  { %v1418_v31 = vmul.f32 %v1927_v30, %v1925_v4  ;;  %v1655_v4 = vld [vmem:[%s2550_s12 + $0x38] sm:$0xff] }
0x1bb6   :  { %v1421_v32 = vpop.permute.xlu0 %1420 }
0x1bb7   :  { %1780 = vmatpush.msk.msra.mxu3 %vm1003_vm0, %v1421_v32 }
0x1bb8   :  { %1781 = vmatmul.msk.f32.vlgmr.msra.gmra.mxu3 %vm1145_vm15, %v1418_v31  ;;  %v1651_v31 = vld [vmem:[%s2550_s12 + $0x18] sm:$0xff] }
0x1bb9   :  { %1788 = vmatpush.xpose.msk.msrb.mxu3 %vm154_vm2, %v2383_v41 }
0x1bc0   :  { %1789 = vmatmul.msk.f32.vlgmr.msrb.gmra.mxu3 %vm154_vm2, %v1539_v21 }
0x1be1   :  { %v1375_v38 = vpop.xlane.xlu0 %1374 }
0x1be2   :  { %v1376_v22 = vsub.f32 %v1372_v26, %v1375_v38  ;;  %v1653_v26 = vld [vmem:[%s2550_s12 + $0x28] sm:$0xff] }
0x1be4   :  { %v1377_v24 = vmul.f32 1.442695, %v1376_v22 }
0x1be6   :  { %1928 = vpow2.f32 %v1377_v24 }
0x1be7   :  { %1930 = vrcp.f32 %v1302_v39  ;;  %v1650_v39 = vld [vmem:[%s2550_s12 + $0x10] sm:$0xff] }
0x1be8   :  { %1932 = vpow2.f32 %v1503_v51  ;;  %v21_v51 = vstv %s2553_s15 }
0x1be9   :  { %22 = vst [vmem:[#allocation2] sm:$0x1] %v21_v51 }
0x1bec   :  { %v1929_v40 = vpop.eup %1928 }
0x1bed   :  { %v1379_v17 = vsel %vm1084_vm12, %v1929_v40, 0.0  ;;  %v1931_v47 = vpop.eup %1930 }
0x1bee   :  { %1380 = vadd.xlane.f32.xlu2 %v1379_v17  ;;  %v1304_v48 = vmul.f32 %v1931_v47, %v1923_v19  ;;  %v1933_v41 = vpop.eup %1932  ;;  %v1660_v19 = vld [vmem:[%s2550_s12 + $0x60] sm:$0xff] }
0x1bef   :  { %v1505_v55 = vsel %vm1084_vm12, %v1933_v41, 0.0  ;;  %v1648_v17 = vld [vmem:[%s2550_s12] sm:$0xff] }
0x1bf4   :  { %v1312_v49 = vpop.permute.xlu0 %1311 }
0x1bf5   :  { %1774 = vmatpush.msk.msra.mxu0 %vm1003_vm0, %v1312_v49  ;;  %v1693_v49 = vld [vmem:[%s2552_s14 + $0x18] sm:$0xff] }
0x1bf6   :  { %1775 = vmatmul.msk.f32.vlgmr.msra.gmra.mxu0 %vm1145_vm15, %v1304_v48  ;;  %1713 = vmatpush.msra.mxu3 %v1693_v49 }
0x1bf7   :  { %1782 = vmatpush.msk.msrb.mxu0 %vm1003_vm0, %v1449_v46 }
0x1bf9   :  { %1790 = vmatpush.msk.msra.mxu0 %vm1003_vm0, %v1576_v35  ;;  %v1692_v35 = vld [vmem:[%s2552_s14 + $0x10] sm:$0xff] }
0x1bfa   :  { %1714 = vmatpush.msra.mxu3 %v1692_v35 }
0x1c3b   :  { %v2431_v50 = vpop.f32.mrf.mxu3 }
0x1c43   :  { %v1559_v52 = vpop.f32.mrf.mxu3 }
0x1c44   :  { %v1562_v53 = vmul.f32 0.35355338, %v1559_v52  ;;  %v1802_v52 = vld [vmem:[%s2551_s13] ss:$0 sm:$0xff] }
0x1c46   :  { %v1563_v54 = vsel %vm1084_vm12, %v1562_v53, -inf }
0x1c47   :  { %1564 = vmax.xlane.f32.xlu2 %v1563_v54 }
0x1c4f   :  { %1506 = vadd.xlane.f32.xlu2 %v1505_v55 }
0x1c61   :  { %v1381_v56 = vpop.xlane.xlu2 %1380 }
0x1c62   :  { %1934 = vrcp.f32 %v1381_v56  ;;  %v1803_v56 = vld [vmem:[#allocation2] ss:$0 sm:$0xff] }
0x1c68   :  { %v1935_v58 = vpop.eup %1934 }
0x1c69   :  { %v1383_v59 = vmul.f32 %v1935_v58, %v1929_v40  ;;  %v1649_v40 = vld [vmem:[%s2550_s12 + $0x8] sm:$0xff] }
0x1c6b   :  { %1783 = vmatmul.msk.f32.vlgmr.msrb.gmra.mxu0 %vm1145_vm15, %v1383_v59 }
0x1c73   :  { %v1335_v63 = vpop.f32.mrf.mxu0 }
0x1c74   :  { %v1338_v0 = vadd.f32 %v1335_v63, %v1268_v62 }
0x1c76   :  { %v2440_v37 = vadd.f32 %v2318_v8, %v1338_v0 }
0x1cba   :  { %v1565_v5 = vpop.xlane.xlu2 %1564 }
0x1cbb   :  { %v1566_v10 = vsub.f32 %v1562_v53, %v1565_v5 }
0x1cbd   :  { %v1567_v34 = vmul.f32 1.442695, %v1566_v10 }
0x1cbf   :  { %1936 = vpow2.f32 %v1567_v34 }
0x1cc2   :  { %v1507_v36 = vpop.xlane.xlu2 %1506 }
0x1cc3   :  { %1938 = vrcp.f32 %v1507_v36 }
0x1cc5   :  { %v1937_v1 = vpop.eup %1936 }
0x1cc6   :  { %v1569_v29 = vsel %vm1084_vm12, %v1937_v1, 0.0 }
0x1cc7   :  { %1570 = vadd.xlane.f32.xlu2 %v1569_v29 }
0x1cc9   :  { %v1939_v13 = vpop.eup %1938 }
0x1cca   :  { %v1509_v8 = vmul.f32 %v1939_v13, %v1933_v41 }
0x1cdf   :  { %1511 = vrot.lane.b32.xlu2 %v1510_v9, %s1945_s26 }
0x1ce8   :  { %v1472_v12 = vpop.f32.mrf.mxu0 }
0x1ce9   :  { %v1473_v28 = vadd.f32 %v1472_v12, %v2431_v50  ;;  %v1691_v50 = vld [vmem:[%s2552_s14 + $0x8] sm:$0xff] }
0x1cea   :  { %1715 = vmatpush.msra.mxu3 %v1691_v50 }
0x1cec   :  { %1716 = vmatpush.msra.mxu3 %v1690_v44 }
0x1d3a   :  { %v1571_v60 = vpop.xlane.xlu2 %1570 }
0x1d3b   :  { %1940 = vrcp.f32 %v1571_v60 }
0x1d41   :  { %v1941_v23 = vpop.eup %1940 }
0x1d42   :  { %v1573_v14 = vmul.f32 %v1941_v23, %v1937_v1  ;;  %v1512_v15 = vpop.permute.xlu2 %1511 }
0x1d43   :  { %1786 = vmatpush.msk.msrb.mxu2 %vm1003_vm0, %v1512_v15 }
0x1d44   :  { %1787 = vmatmul.msk.f32.vlgmr.msrb.gmra.mxu2 %vm1145_vm15, %v1509_v8  ;;  %1791 = vmatmul.msk.f32.vlgmr.msra.gmra.mxu0 %vm1145_vm15, %v1573_v14 }
0x1d45   :  { %1668 = vmatpush.msra.mxu2 %v1663_v11 }
0x1d47   :  { %1669 = vmatpush.msra.mxu2 %v1662_v43 }
0x1d49   :  { %1670 = vmatpush.msra.mxu2 %v1661_v7 }
0x1d4b   :  { %1671 = vmatpush.msra.mxu2 %v1660_v19 }
0x1d4d   :  { %1672 = vmatpush.msra.mxu2 %v1659_v20 }
0x1d4f   :  { %1673 = vmatpush.msra.mxu2 %v1658_v2 }
0x1d51   :  { %1674 = vmatpush.msra.mxu2 %v1657_v42 }
0x1d53   :  { %1675 = vmatpush.msra.mxu2 %v1656_v3 }
0x1d55   :  { %1676 = vmatpush.msra.mxu2 %v1655_v4 }
0x1d57   :  { %1677 = vmatpush.msra.mxu2 %v1654_v25 }
0x1d59   :  { %1678 = vmatpush.msra.mxu2 %v1653_v26 }
0x1d5b   :  { %1679 = vmatpush.msra.mxu2 %v1652_v27 }
0x1d5d   :  { %1680 = vmatpush.msra.mxu2 %v1651_v31 }
0x1d5f   :  { %1681 = vmatpush.msra.mxu2 %v1650_v39 }
0x1d61   :  { %1682 = vmatpush.msra.mxu2 %v1649_v40 }
0x1d63   :  { %1683 = vmatpush.msra.mxu2 %v1648_v17 }
0x1dc1   :  { %v1599_v21 = vpop.f32.mrf.mxu0 }
0x1dc7   :  { %v1535_v30 = vpop.f32.mrf.mxu2 }
0x1dc8   :  { %v1538_v32 = vadd.f32 %v1535_v30, %v1473_v28 }
0x1dca   :  { %v1602_v33 = vadd.f32 %v1599_v21, %v1538_v32 }
0x1dcc   :  { %v1611_v38 = vadd.f32 %v2322_v6, %v1602_v33  ;;  %v1801_v6 = vld [vmem:[%s2548_s11] ss:$0 sm:$0xff] }
0x1dce   :  { %v1613_v22 = vrot.slane %v1611_v38, 5 }
0x1dd0   :  { %v1615_v24 = vsel %vm1003_vm0, %v2440_v37, %v1613_v22 }
0x1dd1   :  { %1792 = vmatmul.msk.f32.vlgmr.msra.gmra.mxu1 %vm154_vm2, %v1615_v24 }
0x1e4e   :  { %v1644_v46 = vpop.f32.mrf.mxu1 }
0x1e4f   :  { %v1645_v47 = vadd.f32 %v1801_v6, %v1644_v46 }
0x1e51   :  { %v1647_v48 = vmax.f32 %v1645_v47, 0.0 }
0x1e53   :  { %1684 = vmatmul.f32.vlgmr.msra.gmra.mxu2 %v1647_v48 }
0x1ed6   :  { %v1685_v53 = vpop.f32.mrf.mxu2 }
0x1ed7   :  { %v1686_v54 = vadd.f32 %v1802_v52, %v1685_v53 }
0x1ed9   :  { %v1688_v41 = vadd.f32 %v1686_v54, %v1615_v24 }
0x1edb   :  { %1942 = vtanh.f32 %v1688_v41 }
0x1ee1   :  { %v1943_v55 = vpop.eup %1942 }
0x1ee2   :  { %1793 = vmatmul.msk.f32.vlgmr.msra.gmra.mxu3 %vm154_vm2, %v1943_v55 }
0x1f65   :  { %v1718_v58 = vpop.f32.mrf.mxu3 }
0x1f66   :  { %v1719_v59 = vadd.f32 %v1803_v56, %v1718_v58 }
0x1f68   :  { %1722 = vst.msk [vmem:[%s2554_s16] sm:$0x3f] %vm1721_vm6, %v1719_v59 }

</bundles_post_ra>
